<compile_context>
chip_gen: v6e
topology: v6e:2x2x1
jax: 0.10.0
libtpu: 0.0.40
codegen_flags: <defaults>
</compile_context>

<pallas_src>
import functools

import jax
import jax.numpy as jnp
from jax.experimental import pallas as pl
from jax.experimental.pallas import tpu as pltpu


def _round_up(x, m):
    return (x + m - 1) // m * m


# ----------------------------------------------------------------------------
# Fused (im2col-matmul + conv bias + BatchNorm(train) + ReLU) kernel
# ----------------------------------------------------------------------------
def _matmul_bn_relu_kernel(a_ref, b_ref, bias_ref, o_ref, *, n_rows, eps):
    """o = relu(batchnorm(a @ b + bias)).

    Batch statistics are taken over the first `n_rows` rows only (rows >=
    n_rows are zero padding introduced by the wrapper).  Accumulation happens
    directly in the resident f32 output block (no scratch)."""
    k = pl.program_id(0)

    @pl.when(k == 0)
    def _():
        o_ref[...] = jnp.zeros_like(o_ref)

    # bf16 operands, f32 accumulation on the MXU.
    o_ref[...] += jnp.dot(a_ref[...], b_ref[...],
                          preferred_element_type=jnp.float32)

    @pl.when(k == pl.num_programs(0) - 1)
    def _():
        acc = o_ref[...] + bias_ref[...]                     # (Mp, Np) f32
        mp = acc.shape[0]
        row = jax.lax.broadcasted_iota(jnp.int32, (mp, 1), 0)
        valid = (row < n_rows).astype(jnp.float32)
        inv_n = 1.0 / float(n_rows)
        mean = jnp.sum(acc * valid, axis=0, keepdims=True) * inv_n
        diff = (acc - mean) * valid
        var = jnp.sum(diff * diff, axis=0, keepdims=True) * inv_n  # biased var
        y = (acc - mean) * jax.lax.rsqrt(var + eps)
        o_ref[...] = jnp.maximum(y, 0.0)


def matmul_bn_relu(a, b, bias, *, eps=1e-5):
    """relu(batchnorm(a @ b + bias)); a:(M,K) b:(K,N) bias:(N,) -> (M,N) f32."""
    M, K = a.shape
    K2, N = b.shape
    assert K == K2
    # Only tile K when it is genuinely large; small K stays untiled and is NOT
    # inflated to a multiple of 128.
    if K > 1024:
        tk = 512
        Kp = _round_up(K, tk)
    else:
        Kp = _round_up(K, 16)
        tk = Kp
    Mp = _round_up(M, 16)
    Np = _round_up(N, 128)

    a_p = jnp.pad(a.astype(jnp.float32), ((0, Mp - M), (0, Kp - K)))
    b_p = jnp.pad(b.astype(jnp.float32), ((0, Kp - K), (0, Np - N)))
    a_p = a_p.astype(jnp.bfloat16)
    b_p = b_p.astype(jnp.bfloat16)
    bias_p = jnp.pad(bias.astype(jnp.float32), (0, Np - N)).reshape(1, Np)

    out = pl.pallas_call(
        functools.partial(_matmul_bn_relu_kernel, n_rows=M, eps=eps),
        out_shape=jax.ShapeDtypeStruct((Mp, Np), jnp.float32),
        grid_spec=pltpu.PrefetchScalarGridSpec(
            num_scalar_prefetch=0,
            grid=(Kp // tk,),
            in_specs=[
                pl.BlockSpec((Mp, tk), lambda k: (0, k)),
                pl.BlockSpec((tk, Np), lambda k: (k, 0)),
                pl.BlockSpec((1, Np), lambda k: (0, 0)),
            ],
            out_specs=pl.BlockSpec((Mp, Np), lambda k: (0, 0)),
        ),
        compiler_params=pltpu.CompilerParams(
            dimension_semantics=("arbitrary",)),
    )(a_p, b_p, bias_p)
    return out[:M, :N]


# ----------------------------------------------------------------------------
# MaxPool2d(kernel_size=2, stride=2) as a 4-way elementwise max
# ----------------------------------------------------------------------------
def _max4_kernel(a_ref, b_ref, c_ref, d_ref, o_ref):
    o_ref[...] = jnp.maximum(jnp.maximum(a_ref[...], b_ref[...]),
                             jnp.maximum(c_ref[...], d_ref[...]))


def maxpool2x2(x):
    """MaxPool2d(2, 2) on an NHWC tensor (floor mode, like PyTorch)."""
    N, H, W, C = x.shape
    Ho, Wo = H // 2, W // 2
    x = x[:, :2 * Ho, :2 * Wo, :]
    views = [x[:, dy::2, dx::2, :].reshape(N * Ho * Wo, C)
             for dy in range(2) for dx in range(2)]
    M = N * Ho * Wo
    out = pl.pallas_call(
        _max4_kernel,
        out_shape=jax.ShapeDtypeStruct((M, C), x.dtype),
        grid=(1,),
        in_specs=[pl.BlockSpec((M, C), lambda i: (0, 0))] * 4,
        out_specs=pl.BlockSpec((M, C), lambda i: (0, 0)),
    )(*views)
    return out.reshape(N, Ho, Wo, C)


# ----------------------------------------------------------------------------
# Layer wrappers
# ----------------------------------------------------------------------------
def conv3x3_bn_relu(x, w, b, *, eps=1e-5):
    """Conv2d(k=3, stride 1, valid, bias) + training-mode BatchNorm2d + ReLU.

    x: NHWC, w: (3, 3, Cin, Cout), b: (Cout,).  One fused Pallas kernel."""
    N, H, W, Cin = x.shape
    Cout = w.shape[-1]
    Ho, Wo = H - 2, W - 2
    patches = jnp.stack(
        [x[:, dy:dy + Ho, dx:dx + Wo, :] for dy in range(3) for dx in range(3)],
        axis=3)                                    # (N, Ho, Wo, 9, Cin)
    M, K = N * Ho * Wo, 9 * Cin
    a = patches.reshape(M, K)
    bmat = w.reshape(K, Cout)
    out = matmul_bn_relu(a, bmat, b, eps=eps)
    return out.reshape(N, Ho, Wo, Cout)


# ----------------------------------------------------------------------------
# Parameters (PyTorch-default-like uniform init, deterministic)
# ----------------------------------------------------------------------------
def init_params(key, in_channels, out_channels):
    ks = jax.random.split(key, 4)

    def uniform(k, shape, fan_in):
        bound = 1.0 / (fan_in ** 0.5)
        return jax.random.uniform(k, shape, jnp.float32, -bound, bound)

    return {
        "w1": uniform(ks[0], (3, 3, in_channels, out_channels), 9 * in_channels),
        "b1": uniform(ks[1], (out_channels,), 9 * in_channels),
        "w2": uniform(ks[2], (3, 3, out_channels, out_channels), 9 * out_channels),
        "b2": uniform(ks[3], (out_channels,), 9 * out_channels),
    }


# ----------------------------------------------------------------------------
# _EncoderBlock forward (dropout=False)
# ----------------------------------------------------------------------------
def encoder_block_forward(x_nchw, params):
    x = jnp.transpose(x_nchw, (0, 2, 3, 1)).astype(jnp.float32)   # -> NHWC
    y = conv3x3_bn_relu(x, params["w1"], params["b1"])
    y = conv3x3_bn_relu(y, params["w2"], params["b2"])
    # TODO(synk): nn.Dropout (only present when dropout=True) is not
    # implemented; the default dropout=False forward path is what runs here.
    y = maxpool2x2(y)
    return jnp.transpose(y, (0, 3, 1, 2))                         # -> NCHW


# ----------------------------------------------------------------------------
if __name__ == "__main__":
    key = jax.random.PRNGKey(0)
    k_x, k_p = jax.random.split(key)

    in_channels, out_channels = 4, 32
    x = jax.random.normal(k_x, (2, in_channels, 16, 16), jnp.float32)
    params = init_params(k_p, in_channels, out_channels)

    fwd = jax.jit(encoder_block_forward)
    out = jax.block_until_ready(fwd(x, params))

    # 16 -> 14 (conv1) -> 12 (conv2) -> 6 (maxpool)
    assert out.shape == (2, out_channels, 6, 6), out.shape
    assert bool(jnp.all(jnp.isfinite(out)))
    print("KERNEL_OK")
</pallas_src>

<mosaic_0001>
module attributes {stable_mosaic.version = 11 : i64} {
  func.func @_matmul_bn_relu_kernel(%arg0: i32, %arg1: memref<400x48xbf16, #tpu.memory_space<vmem>>, %arg2: memref<48x128xbf16, #tpu.memory_space<vmem>>, %arg3: memref<1x128xf32, #tpu.memory_space<vmem>>, %arg4: memref<400x128xf32, #tpu.memory_space<vmem>>) attributes {dimension_semantics = [#tpu.dimension_semantics<arbitrary>], iteration_bounds = array<i64: 1>, scalar_prefetch = 0 : i64, scratch_operands = 0 : i64, tpu.core_type = #tpu.core_type<tc>, window_params = [{transform_indices = @transform_0, window_bounds = array<i64: 400, 48>}, {transform_indices = @transform_1, window_bounds = array<i64: 48, 128>}, {pipeline_mode = #tpu.pipeline_mode<synchronous>, transform_indices = @transform_2, window_bounds = array<i64: 1, 128>}, {pipeline_mode = #tpu.pipeline_mode<synchronous>, transform_indices = @transform_3, window_bounds = array<i64: 400, 128>}]} {
    %c0_i32 = arith.constant 0 : i32
    %0 = arith.cmpi eq, %arg0, %c0_i32 : i32
    %1 = arith.extui %0 : i1 to i32
    %c0_i32_0 = arith.constant 0 : i32
    %2 = arith.cmpi ne, %1, %c0_i32_0 : i32
    scf.if %2 {
      %cst_10 = arith.constant 0.000000e+00 : f32
      %12 = vector.broadcast %cst_10 : f32 to vector<400x128xf32>
      %c0_11 = arith.constant 0 : index
      %c0_12 = arith.constant 0 : index
      %13 = vector.load %arg4[%c0_11, %c0_12] : memref<400x128xf32, #tpu.memory_space<vmem>>, vector<400x128xf32>
      tpu.vector_store %arg4[%c0_11, %c0_12], %12 {strides = array<i32>} : memref<400x128xf32, #tpu.memory_space<vmem>>, vector<400x128xf32>,
    } else {
    }
    %c0 = arith.constant 0 : index
    %c0_1 = arith.constant 0 : index
    %3 = vector.load %arg4[%c0, %c0_1] : memref<400x128xf32, #tpu.memory_space<vmem>>, vector<400x128xf32>
    %c0_2 = arith.constant 0 : index
    %c0_3 = arith.constant 0 : index
    %4 = vector.load %arg1[%c0_2, %c0_3] : memref<400x48xbf16, #tpu.memory_space<vmem>>, vector<400x48xbf16>
    %c0_4 = arith.constant 0 : index
    %c0_5 = arith.constant 0 : index
    %5 = vector.load %arg2[%c0_4, %c0_5] : memref<48x128xbf16, #tpu.memory_space<vmem>>, vector<48x128xbf16>
    %cst = arith.constant dense<0.000000e+00> : vector<400x128xf32>
    %6 = tpu.matmul %4, %5, %cst {dimension_numbers = #tpu.dot_dimension_numbers<[1], [0], [0], [1], [0, 0, 1, 1], [], []>} : vector<400x48xbf16>, vector<48x128xbf16>, vector<400x128xf32> -> vector<400x128xf32>
    %7 = arith.addf %3, %6 : vector<400x128xf32>
    %c0_6 = arith.constant 0 : index
    %c0_7 = arith.constant 0 : index
    %8 = vector.load %arg4[%c0_6, %c0_7] : memref<400x128xf32, #tpu.memory_space<vmem>>, vector<400x128xf32>
    tpu.vector_store %arg4[%c0_6, %c0_7], %7 {strides = array<i32>} : memref<400x128xf32, #tpu.memory_space<vmem>>, vector<400x128xf32>,
    %c0_i32_8 = arith.constant 0 : i32
    %9 = arith.cmpi eq, %arg0, %c0_i32_8 : i32
    %10 = arith.extui %9 : i1 to i32
    %c0_i32_9 = arith.constant 0 : i32
    %11 = arith.cmpi ne, %10, %c0_i32_9 : i32
    scf.if %11 {
      %c0_10 = arith.constant 0 : index
      %c0_11 = arith.constant 0 : index
      %12 = vector.load %arg4[%c0_10, %c0_11] : memref<400x128xf32, #tpu.memory_space<vmem>>, vector<400x128xf32>
      %c0_12 = arith.constant 0 : index
      %c0_13 = arith.constant 0 : index
      %13 = vector.load %arg3[%c0_12, %c0_13] : memref<1x128xf32, #tpu.memory_space<vmem>>, vector<1x128xf32>
      %14 = vector.broadcast %13 : vector<1x128xf32> to vector<400x128xf32>
      %15 = arith.addf %12, %14 : vector<400x128xf32>
      %16 = tpu.iota {dimensions = array<i32: 0>} : vector<400x1xi32>
      %c392_i32 = arith.constant 392 : i32
      %17 = vector.broadcast %c392_i32 : i32 to vector<400x1xi32>
      %18 = arith.cmpi slt, %16, %17 : vector<400x1xi32>
      %19 = arith.extui %18 : vector<400x1xi1> to vector<400x1xi32>
      %20 = arith.sitofp %19 : vector<400x1xi32> to vector<400x1xf32>
      %21 = vector.broadcast %20 : vector<400x1xf32> to vector<400x128xf32>
      %22 = arith.mulf %15, %21 : vector<400x128xf32>
      %cst_14 = arith.constant dense<0.000000e+00> : vector<128xf32>
      %23 = vector.multi_reduction <add>, %22, %cst_14 [0] : vector<400x128xf32> to vector<128xf32>
      %24 = vector.shape_cast %23 : vector<128xf32> to vector<1x128xf32>
      %cst_15 = arith.constant 0.00255102036 : f32
      %25 = vector.broadcast %cst_15 : f32 to vector<1x128xf32>
      %26 = arith.mulf %24, %25 : vector<1x128xf32>
      %27 = vector.broadcast %26 : vector<1x128xf32> to vector<400x128xf32>
      %28 = arith.subf %15, %27 : vector<400x128xf32>
      %29 = vector.broadcast %20 : vector<400x1xf32> to vector<400x128xf32>
      %30 = arith.mulf %28, %29 : vector<400x128xf32>
      %31 = arith.mulf %30, %30 : vector<400x128xf32>
      %cst_16 = arith.constant dense<0.000000e+00> : vector<128xf32>
      %32 = vector.multi_reduction <add>, %31, %cst_16 [0] : vector<400x128xf32> to vector<128xf32>
      %33 = vector.shape_cast %32 : vector<128xf32> to vector<1x128xf32>
      %cst_17 = arith.constant 0.00255102036 : f32
      %34 = vector.broadcast %cst_17 : f32 to vector<1x128xf32>
      %35 = arith.mulf %33, %34 : vector<1x128xf32>
      %36 = vector.broadcast %26 : vector<1x128xf32> to vector<400x128xf32>
      %37 = arith.subf %15, %36 : vector<400x128xf32>
      %cst_18 = arith.constant 9.99999974E-6 : f32
      %38 = vector.broadcast %cst_18 : f32 to vector<1x128xf32>
      %39 = arith.addf %35, %38 : vector<1x128xf32>
      %40 = math.rsqrt %39 : vector<1x128xf32>
      %41 = vector.broadcast %40 : vector<1x128xf32> to vector<400x128xf32>
      %42 = arith.mulf %37, %41 : vector<400x128xf32>
      %cst_19 = arith.constant 0.000000e+00 : f32
      %43 = vector.broadcast %cst_19 : f32 to vector<400x128xf32>
      %44 = arith.maximumf %42, %43 : vector<400x128xf32>
      %c0_20 = arith.constant 0 : index
      %c0_21 = arith.constant 0 : index
      %45 = vector.load %arg4[%c0_20, %c0_21] : memref<400x128xf32, #tpu.memory_space<vmem>>, vector<400x128xf32>
      tpu.vector_store %arg4[%c0_20, %c0_21], %44 {strides = array<i32>} : memref<400x128xf32, #tpu.memory_space<vmem>>, vector<400x128xf32>,
    } else {
    }
    return
  }
  func.func @transform_0(%arg0: i32) -> (i32, i32) {
    %c0_i32 = arith.constant 0 : i32
    %c0_i32_0 = arith.constant 0 : i32
    return %c0_i32, %arg0 : i32, i32
  }
  func.func @transform_1(%arg0: i32) -> (i32, i32) {
    %c0_i32 = arith.constant 0 : i32
    %c0_i32_0 = arith.constant 0 : i32
    return %arg0, %c0_i32 : i32, i32
  }
  func.func @transform_2(%arg0: i32) -> (i32, i32) {
    %c0_i32 = arith.constant 0 : i32
    %c0_i32_0 = arith.constant 0 : i32
    %c0_i32_1 = arith.constant 0 : i32
    return %c0_i32, %c0_i32_0 : i32, i32
  }
  func.func @transform_3(%arg0: i32) -> (i32, i32) {
    %c0_i32 = arith.constant 0 : i32
    %c0_i32_0 = arith.constant 0 : i32
    %c0_i32_1 = arith.constant 0 : i32
    return %c0_i32, %c0_i32_0 : i32, i32
  }
}

module attributes {stable_mosaic.version = 11 : i64} {
  func.func @_matmul_bn_relu_kernel(%arg0: i32, %arg1: memref<288x288xbf16, #tpu.memory_space<vmem>>, %arg2: memref<288x128xbf16, #tpu.memory_space<vmem>>, %arg3: memref<1x128xf32, #tpu.memory_space<vmem>>, %arg4: memref<288x128xf32, #tpu.memory_space<vmem>>) attributes {dimension_semantics = [#tpu.dimension_semantics<arbitrary>], iteration_bounds = array<i64: 1>, scalar_prefetch = 0 : i64, scratch_operands = 0 : i64, tpu.core_type = #tpu.core_type<tc>, window_params = [{transform_indices = @transform_0, window_bounds = array<i64: 288, 288>}, {transform_indices = @transform_1, window_bounds = array<i64: 288, 128>}, {pipeline_mode = #tpu.pipeline_mode<synchronous>, transform_indices = @transform_2, window_bounds = array<i64: 1, 128>}, {pipeline_mode = #tpu.pipeline_mode<synchronous>, transform_indices = @transform_3, window_bounds = array<i64: 288, 128>}]} {
    %c0_i32 = arith.constant 0 : i32
    %0 = arith.cmpi eq, %arg0, %c0_i32 : i32
    %1 = arith.extui %0 : i1 to i32
    %c0_i32_0 = arith.constant 0 : i32
    %2 = arith.cmpi ne, %1, %c0_i32_0 : i32
    scf.if %2 {
      %cst_10 = arith.constant 0.000000e+00 : f32
      %12 = vector.broadcast %cst_10 : f32 to vector<288x128xf32>
      %c0_11 = arith.constant 0 : index
      %c0_12 = arith.constant 0 : index
      %13 = vector.load %arg4[%c0_11, %c0_12] : memref<288x128xf32, #tpu.memory_space<vmem>>, vector<288x128xf32>
      tpu.vector_store %arg4[%c0_11, %c0_12], %12 {strides = array<i32>} : memref<288x128xf32, #tpu.memory_space<vmem>>, vector<288x128xf32>,
    } else {
    }
    %c0 = arith.constant 0 : index
    %c0_1 = arith.constant 0 : index
    %3 = vector.load %arg4[%c0, %c0_1] : memref<288x128xf32, #tpu.memory_space<vmem>>, vector<288x128xf32>
    %c0_2 = arith.constant 0 : index
    %c0_3 = arith.constant 0 : index
    %4 = vector.load %arg1[%c0_2, %c0_3] : memref<288x288xbf16, #tpu.memory_space<vmem>>, vector<288x288xbf16>
    %c0_4 = arith.constant 0 : index
    %c0_5 = arith.constant 0 : index
    %5 = vector.load %arg2[%c0_4, %c0_5] : memref<288x128xbf16, #tpu.memory_space<vmem>>, vector<288x128xbf16>
    %cst = arith.constant dense<0.000000e+00> : vector<288x128xf32>
    %6 = tpu.matmul %4, %5, %cst {dimension_numbers = #tpu.dot_dimension_numbers<[1], [0], [0], [1], [0, 0, 1, 1], [], []>} : vector<288x288xbf16>, vector<288x128xbf16>, vector<288x128xf32> -> vector<288x128xf32>
    %7 = arith.addf %3, %6 : vector<288x128xf32>
    %c0_6 = arith.constant 0 : index
    %c0_7 = arith.constant 0 : index
    %8 = vector.load %arg4[%c0_6, %c0_7] : memref<288x128xf32, #tpu.memory_space<vmem>>, vector<288x128xf32>
    tpu.vector_store %arg4[%c0_6, %c0_7], %7 {strides = array<i32>} : memref<288x128xf32, #tpu.memory_space<vmem>>, vector<288x128xf32>,
    %c0_i32_8 = arith.constant 0 : i32
    %9 = arith.cmpi eq, %arg0, %c0_i32_8 : i32
    %10 = arith.extui %9 : i1 to i32
    %c0_i32_9 = arith.constant 0 : i32
    %11 = arith.cmpi ne, %10, %c0_i32_9 : i32
    scf.if %11 {
      %c0_10 = arith.constant 0 : index
      %c0_11 = arith.constant 0 : index
      %12 = vector.load %arg4[%c0_10, %c0_11] : memref<288x128xf32, #tpu.memory_space<vmem>>, vector<288x128xf32>
      %c0_12 = arith.constant 0 : index
      %c0_13 = arith.constant 0 : index
      %13 = vector.load %arg3[%c0_12, %c0_13] : memref<1x128xf32, #tpu.memory_space<vmem>>, vector<1x128xf32>
      %14 = vector.broadcast %13 : vector<1x128xf32> to vector<288x128xf32>
      %15 = arith.addf %12, %14 : vector<288x128xf32>
      %16 = tpu.iota {dimensions = array<i32: 0>} : vector<288x1xi32>
      %c288_i32 = arith.constant 288 : i32
      %17 = vector.broadcast %c288_i32 : i32 to vector<288x1xi32>
      %18 = arith.cmpi slt, %16, %17 : vector<288x1xi32>
      %19 = arith.extui %18 : vector<288x1xi1> to vector<288x1xi32>
      %20 = arith.sitofp %19 : vector<288x1xi32> to vector<288x1xf32>
      %21 = vector.broadcast %20 : vector<288x1xf32> to vector<288x128xf32>
      %22 = arith.mulf %15, %21 : vector<288x128xf32>
      %cst_14 = arith.constant dense<0.000000e+00> : vector<128xf32>
      %23 = vector.multi_reduction <add>, %22, %cst_14 [0] : vector<288x128xf32> to vector<128xf32>
      %24 = vector.shape_cast %23 : vector<128xf32> to vector<1x128xf32>
      %cst_15 = arith.constant 0.00347222225 : f32
      %25 = vector.broadcast %cst_15 : f32 to vector<1x128xf32>
      %26 = arith.mulf %24, %25 : vector<1x128xf32>
      %27 = vector.broadcast %26 : vector<1x128xf32> to vector<288x128xf32>
      %28 = arith.subf %15, %27 : vector<288x128xf32>
      %29 = vector.broadcast %20 : vector<288x1xf32> to vector<288x128xf32>
      %30 = arith.mulf %28, %29 : vector<288x128xf32>
      %31 = arith.mulf %30, %30 : vector<288x128xf32>
      %cst_16 = arith.constant dense<0.000000e+00> : vector<128xf32>
      %32 = vector.multi_reduction <add>, %31, %cst_16 [0] : vector<288x128xf32> to vector<128xf32>
      %33 = vector.shape_cast %32 : vector<128xf32> to vector<1x128xf32>
      %cst_17 = arith.constant 0.00347222225 : f32
      %34 = vector.broadcast %cst_17 : f32 to vector<1x128xf32>
      %35 = arith.mulf %33, %34 : vector<1x128xf32>
      %36 = vector.broadcast %26 : vector<1x128xf32> to vector<288x128xf32>
      %37 = arith.subf %15, %36 : vector<288x128xf32>
      %cst_18 = arith.constant 9.99999974E-6 : f32
      %38 = vector.broadcast %cst_18 : f32 to vector<1x128xf32>
      %39 = arith.addf %35, %38 : vector<1x128xf32>
      %40 = math.rsqrt %39 : vector<1x128xf32>
      %41 = vector.broadcast %40 : vector<1x128xf32> to vector<288x128xf32>
      %42 = arith.mulf %37, %41 : vector<288x128xf32>
      %cst_19 = arith.constant 0.000000e+00 : f32
      %43 = vector.broadcast %cst_19 : f32 to vector<288x128xf32>
      %44 = arith.maximumf %42, %43 : vector<288x128xf32>
      %c0_20 = arith.constant 0 : index
      %c0_21 = arith.constant 0 : index
      %45 = vector.load %arg4[%c0_20, %c0_21] : memref<288x128xf32, #tpu.memory_space<vmem>>, vector<288x128xf32>
      tpu.vector_store %arg4[%c0_20, %c0_21], %44 {strides = array<i32>} : memref<288x128xf32, #tpu.memory_space<vmem>>, vector<288x128xf32>,
    } else {
    }
    return
  }
  func.func @transform_0(%arg0: i32) -> (i32, i32) {
    %c0_i32 = arith.constant 0 : i32
    %c0_i32_0 = arith.constant 0 : i32
    return %c0_i32, %arg0 : i32, i32
  }
  func.func @transform_1(%arg0: i32) -> (i32, i32) {
    %c0_i32 = arith.constant 0 : i32
    %c0_i32_0 = arith.constant 0 : i32
    return %arg0, %c0_i32 : i32, i32
  }
  func.func @transform_2(%arg0: i32) -> (i32, i32) {
    %c0_i32 = arith.constant 0 : i32
    %c0_i32_0 = arith.constant 0 : i32
    %c0_i32_1 = arith.constant 0 : i32
    return %c0_i32, %c0_i32_0 : i32, i32
  }
  func.func @transform_3(%arg0: i32) -> (i32, i32) {
    %c0_i32 = arith.constant 0 : i32
    %c0_i32_0 = arith.constant 0 : i32
    %c0_i32_1 = arith.constant 0 : i32
    return %c0_i32, %c0_i32_0 : i32, i32
  }
}

module attributes {stable_mosaic.version = 11 : i64} {
  func.func @_max4_kernel(%arg0: i32, %arg1: memref<72x32xf32, #tpu.memory_space<vmem>>, %arg2: memref<72x32xf32, #tpu.memory_space<vmem>>, %arg3: memref<72x32xf32, #tpu.memory_space<vmem>>, %arg4: memref<72x32xf32, #tpu.memory_space<vmem>>, %arg5: memref<72x32xf32, #tpu.memory_space<vmem>>) attributes {dimension_semantics = [#tpu.dimension_semantics<arbitrary>], iteration_bounds = array<i64: 1>, scalar_prefetch = 0 : i64, scratch_operands = 0 : i64, tpu.core_type = #tpu.core_type<tc>, window_params = [{pipeline_mode = #tpu.pipeline_mode<synchronous>, transform_indices = @transform_0, window_bounds = array<i64: 72, 32>}, {pipeline_mode = #tpu.pipeline_mode<synchronous>, transform_indices = @transform_1, window_bounds = array<i64: 72, 32>}, {pipeline_mode = #tpu.pipeline_mode<synchronous>, transform_indices = @transform_2, window_bounds = array<i64: 72, 32>}, {pipeline_mode = #tpu.pipeline_mode<synchronous>, transform_indices = @transform_3, window_bounds = array<i64: 72, 32>}, {pipeline_mode = #tpu.pipeline_mode<synchronous>, transform_indices = @transform_4, window_bounds = array<i64: 72, 32>}]} {
    %c0 = arith.constant 0 : index
    %c0_0 = arith.constant 0 : index
    %0 = vector.load %arg1[%c0, %c0_0] : memref<72x32xf32, #tpu.memory_space<vmem>>, vector<72x32xf32>
    %c0_1 = arith.constant 0 : index
    %c0_2 = arith.constant 0 : index
    %1 = vector.load %arg2[%c0_1, %c0_2] : memref<72x32xf32, #tpu.memory_space<vmem>>, vector<72x32xf32>
    %2 = arith.maximumf %0, %1 : vector<72x32xf32>
    %c0_3 = arith.constant 0 : index
    %c0_4 = arith.constant 0 : index
    %3 = vector.load %arg3[%c0_3, %c0_4] : memref<72x32xf32, #tpu.memory_space<vmem>>, vector<72x32xf32>
    %c0_5 = arith.constant 0 : index
    %c0_6 = arith.constant 0 : index
    %4 = vector.load %arg4[%c0_5, %c0_6] : memref<72x32xf32, #tpu.memory_space<vmem>>, vector<72x32xf32>
    %5 = arith.maximumf %3, %4 : vector<72x32xf32>
    %6 = arith.maximumf %2, %5 : vector<72x32xf32>
    %c0_7 = arith.constant 0 : index
    %c0_8 = arith.constant 0 : index
    %7 = vector.load %arg5[%c0_7, %c0_8] : memref<72x32xf32, #tpu.memory_space<vmem>>, vector<72x32xf32>
    tpu.vector_store %arg5[%c0_7, %c0_8], %6 {strides = array<i32>} : memref<72x32xf32, #tpu.memory_space<vmem>>, vector<72x32xf32>,
    return
  }
  func.func @transform_0(%arg0: i32) -> (i32, i32) {
    %c0_i32 = arith.constant 0 : i32
    %c0_i32_0 = arith.constant 0 : i32
    %c0_i32_1 = arith.constant 0 : i32
    return %c0_i32, %c0_i32_0 : i32, i32
  }
  func.func @transform_1(%arg0: i32) -> (i32, i32) {
    %c0_i32 = arith.constant 0 : i32
    %c0_i32_0 = arith.constant 0 : i32
    %c0_i32_1 = arith.constant 0 : i32
    return %c0_i32, %c0_i32_0 : i32, i32
  }
  func.func @transform_2(%arg0: i32) -> (i32, i32) {
    %c0_i32 = arith.constant 0 : i32
    %c0_i32_0 = arith.constant 0 : i32
    %c0_i32_1 = arith.constant 0 : i32
    return %c0_i32, %c0_i32_0 : i32, i32
  }
  func.func @transform_3(%arg0: i32) -> (i32, i32) {
    %c0_i32 = arith.constant 0 : i32
    %c0_i32_0 = arith.constant 0 : i32
    %c0_i32_1 = arith.constant 0 : i32
    return %c0_i32, %c0_i32_0 : i32, i32
  }
  func.func @transform_4(%arg0: i32) -> (i32, i32) {
    %c0_i32 = arith.constant 0 : i32
    %c0_i32_0 = arith.constant 0 : i32
    %c0_i32_1 = arith.constant 0 : i32
    return %c0_i32, %c0_i32_0 : i32, i32
  }
}

</mosaic_0001>

<bundles_post_ra>
// kernel: encoder_block_forward.3
= control target key start
LH: loop header
LB: loop body
LE: loop exit
PB: predicated region body
PF: predicated region fallthrough
CT: control target
= control target key end

     0   :  { %v1732_v0 = vmov 0.0   ;;  %vm1733_vm0 = vmmov 0   ;;  %vm318_vm1 = vcmask 392192   ;;  %s2758_s1 = inlined_call_operand.vmem [shape: bf16[48,128], index: 1, kind: input, shape index: {}]   ;;  %s2759_s0 = inlined_call_operand.vmem [shape: bf16[400,48], index: 0, kind: input, shape index: {}]   ;;  %s2760_s2 = inlined_call_operand.vmem [shape: f32[1,128], index: 2, kind: input, shape index: {}]   ;;  %s2761_s3 = inlined_call_operand.vmem [shape: f32[400,128], index: 3, kind: output, shape index: {}]  }
   0x1   :  { %1588 = vmatprep.subr.bf16.mxu0 %v1732_v0  ;;  %v1702_v1 = vld [vmem:[%s2758_s1 + $0x10] sm:$0xff]   ;;  %1594 = vmatprep.mubr.msk.bf16.mxu0 %vm1733_vm0, %v1732_v0  ;;  %v1703_v2 = vld [vmem:[%s2758_s1 + $0x8] sm:$0xff]   ;;  %v1704_v3 = vld [vmem:[%s2758_s1] sm:$0xff]  }
   0x2   :  { %1694 = vmatprep.subr.bf16.mxu1 %v1732_v0  ;;  %1646 = vmatprep.mubr.msk.bf16.mxu1 %vm1733_vm0, %v1732_v0  ;;  %v1705_v4 = vld [vmem:[%s2759_s0] sm:$0xff]   ;;  %v1712_v5 = vld [vmem:[%s2759_s0 + $0x68] sm:$0xff]   ;;  %v1714_v7 = vld [vmem:[%s2759_s0 + $0x70] sm:$0xff]  }
   0x3   :  { %1589 = vmatpush3.bf16.msra.mxu0 %v1702_v1  ;;  %1697 = vmatpush3.bf16.msra.mxu1 %v1702_v1  ;;  %v1706_v6 = vld [vmem:[%s2759_s0 + $0x8] sm:$0xff]   ;;  %v1707_v8 = vld [vmem:[%s2759_s0 + $0x10] sm:$0xff]   ;;  %v1716_v9 = vld [vmem:[%s2759_s0 + $0x78] sm:$0xff]  }
   0x4   :  { %1590 = vmatprep.subr.bf16.mxu0 %v1732_v0  ;;  %1695 = vmatprep.subr.bf16.mxu1 %v1732_v0  ;;  %v1708_v10 = vld [vmem:[%s2759_s0 + $0x18] sm:$0xff]   ;;  %v1718_v11 = vld [vmem:[%s2759_s0 + $0x80] sm:$0xff]   ;;  %v1720_v13 = vld [vmem:[%s2759_s0 + $0x88] sm:$0xff]  }
   0x5   :  { %v1709_v12 = vld [vmem:[%s2759_s0 + $0x20] sm:$0xff]   ;;  %v1710_v14 = vld [vmem:[%s2759_s0 + $0x28] sm:$0xff]   ;;  %v1722_v15 = vld [vmem:[%s2759_s0 + $0x90] sm:$0xff]  }
   0x6   :  { %v1711_v16 = vld [vmem:[%s2759_s0 + $0x30] sm:$0xff]   ;;  %v1724_v17 = vld [vmem:[%s2759_s0 + $0x98] sm:$0xff]   ;;  %v1725_v19 = vld [vmem:[%s2759_s0 + $0xa0] sm:$0xff]  }
   0x7   :  { %1591 = vmatpush3.bf16.msra.mxu0 %v1703_v2  ;;  %1698 = vmatpush3.bf16.msra.mxu1 %v1703_v2  ;;  %v1713_v18 = vld [vmem:[%s2759_s0 + $0x38] sm:$0xff]   ;;  %v1715_v20 = vld [vmem:[%s2759_s0 + $0x40] sm:$0xff]   ;;  %v1726_v21 = vld [vmem:[%s2759_s0 + $0xa8] sm:$0xff]  }
   0x8   :  { %1592 = vmatprep.subr.bf16.mxu0 %v1732_v0  ;;  %1696 = vmatprep.subr.bf16.mxu1 %v1732_v0  ;;  %v1717_v22 = vld [vmem:[%s2759_s0 + $0x48] sm:$0xff]   ;;  %v1727_v23 = vld [vmem:[%s2759_s0 + $0xb0] sm:$0xff]   ;;  %v1728_v25 = vld [vmem:[%s2759_s0 + $0xb8] sm:$0xff]  }
   0x9   :  { %v1719_v24 = vld [vmem:[%s2759_s0 + $0x50] sm:$0xff]   ;;  %v1721_v26 = vld [vmem:[%s2759_s0 + $0x58] sm:$0xff]   ;;  %v1729_v27 = vld [vmem:[%s2759_s0 + $0xc0] sm:$0xff]  }
   0xa   :  { %v1723_v28 = vld [vmem:[%s2759_s0 + $0x60] sm:$0xff]  }
   0xb   :  { %1593 = vmatpush3.bf16.msra.mxu0 %v1704_v3  ;;  %1699 = vmatpush3.bf16.msra.mxu1 %v1704_v3 }
   0xe   :  { %1595 = vmatmul.mubr.msk.bf16.vlgmr.msra.gmra.mxu0 %vm318_vm1, %v1705_v4  ;;  %1647 = vmatmul.mubr.msk.bf16.vlgmr.msra.gmra.mxu1 %vm318_vm1, %v1712_v5 }
   0xf   :  { %1598 = vmatprep.mubr.msk.bf16.mxu0 %vm1733_vm0, %v1732_v0  ;;  %1650 = vmatprep.mubr.msk.bf16.mxu1 %vm1733_vm0, %v1732_v0 }
  0x16   :  { %1599 = vmatmul.mubr.msk.bf16.gmra.mxu0 %vm318_vm1, %v1706_v6  ;;  %1651 = vmatmul.mubr.msk.bf16.gmra.mxu1 %vm318_vm1, %v1714_v7 }
  0x17   :  { %1602 = vmatprep.mubr.msk.bf16.mxu0 %vm1733_vm0, %v1732_v0  ;;  %1654 = vmatprep.mubr.msk.bf16.mxu1 %vm1733_vm0, %v1732_v0 }
  0x1e   :  { %1603 = vmatmul.mubr.msk.bf16.gmra.mxu0 %vm318_vm1, %v1707_v8  ;;  %1655 = vmatmul.mubr.msk.bf16.gmra.mxu1 %vm318_vm1, %v1716_v9 }
  0x1f   :  { %1606 = vmatprep.mubr.msk.bf16.mxu0 %vm1733_vm0, %v1732_v0  ;;  %1658 = vmatprep.mubr.msk.bf16.mxu1 %vm1733_vm0, %v1732_v0 }
  0x26   :  { %1607 = vmatmul.mubr.msk.bf16.gmra.mxu0 %vm318_vm1, %v1708_v10  ;;  %1659 = vmatmul.mubr.msk.bf16.gmra.mxu1 %vm318_vm1, %v1718_v11 }
  0x27   :  { %1610 = vmatprep.mubr.msk.bf16.mxu0 %vm1733_vm0, %v1732_v0  ;;  %1662 = vmatprep.mubr.msk.bf16.mxu1 %vm1733_vm0, %v1732_v0 }
  0x2e   :  { %1611 = vmatmul.mubr.msk.bf16.gmra.mxu0 %vm318_vm1, %v1709_v12  ;;  %1663 = vmatmul.mubr.msk.bf16.gmra.mxu1 %vm318_vm1, %v1720_v13 }
  0x2f   :  { %1614 = vmatprep.mubr.msk.bf16.mxu0 %vm1733_vm0, %v1732_v0  ;;  %1666 = vmatprep.mubr.msk.bf16.mxu1 %vm1733_vm0, %v1732_v0 }
  0x36   :  { %1615 = vmatmul.mubr.msk.bf16.gmra.mxu0 %vm318_vm1, %v1710_v14  ;;  %1667 = vmatmul.mubr.msk.bf16.gmra.mxu1 %vm318_vm1, %v1722_v15 }
  0x37   :  { %1618 = vmatprep.mubr.msk.bf16.mxu0 %vm1733_vm0, %v1732_v0  ;;  %1670 = vmatprep.mubr.msk.bf16.mxu1 %vm1733_vm0, %v1732_v0 }
  0x3e   :  { %1619 = vmatmul.mubr.msk.bf16.gmra.mxu0 %vm318_vm1, %v1711_v16  ;;  %1671 = vmatmul.mubr.msk.bf16.gmra.mxu1 %vm318_vm1, %v1724_v17  ;;  %v1948_v17 = vld [vmem:[%s2760_s2] ss:$0 sm:$0xff] }
  0x3f   :  { %1622 = vmatprep.mubr.msk.bf16.mxu0 %vm1733_vm0, %v1732_v0  ;;  %1674 = vmatprep.mubr.msk.bf16.mxu1 %vm1733_vm0, %v1732_v0 }
  0x46   :  { %1623 = vmatmul.mubr.msk.bf16.gmra.mxu0 %vm318_vm1, %v1713_v18  ;;  %1675 = vmatmul.mubr.msk.bf16.gmra.mxu1 %vm318_vm1, %v1725_v19 }
  0x47   :  { %1626 = vmatprep.mubr.msk.bf16.mxu0 %vm1733_vm0, %v1732_v0  ;;  %1678 = vmatprep.mubr.msk.bf16.mxu1 %vm1733_vm0, %v1732_v0 }
  0x4e   :  { %1627 = vmatmul.mubr.msk.bf16.gmra.mxu0 %vm318_vm1, %v1715_v20  ;;  %1679 = vmatmul.mubr.msk.bf16.gmra.mxu1 %vm318_vm1, %v1726_v21 }
  0x4f   :  { %1630 = vmatprep.mubr.msk.bf16.mxu0 %vm1733_vm0, %v1732_v0  ;;  %1682 = vmatprep.mubr.msk.bf16.mxu1 %vm1733_vm0, %v1732_v0 }
  0x56   :  { %1631 = vmatmul.mubr.msk.bf16.gmra.mxu0 %vm318_vm1, %v1717_v22  ;;  %1683 = vmatmul.mubr.msk.bf16.gmra.mxu1 %vm318_vm1, %v1727_v23 }
  0x57   :  { %1634 = vmatprep.mubr.msk.bf16.mxu0 %vm1733_vm0, %v1732_v0  ;;  %1686 = vmatprep.mubr.msk.bf16.mxu1 %vm1733_vm0, %v1732_v0 }
  0x5e   :  { %1635 = vmatmul.mubr.msk.bf16.gmra.mxu0 %vm318_vm1, %v1719_v24  ;;  %1687 = vmatmul.mubr.msk.bf16.gmra.mxu1 %vm318_vm1, %v1728_v25 }
  0x5f   :  { %1638 = vmatprep.mubr.msk.bf16.mxu0 %vm1733_vm0, %v1732_v0  ;;  %1690 = vmatprep.mubr.msk.bf16.mxu1 %vm1733_vm0, %v1732_v0 }
  0x66   :  { %1639 = vmatmul.mubr.msk.bf16.gmra.mxu0 %vm318_vm1, %v1721_v26  ;;  %1691 = vmatmul.mubr.msk.bf16.gmra.mxu1 %vm318_vm1, %v1729_v27 }
  0x67   :  { %1642 = vmatprep.mubr.msk.bf16.mxu0 %vm1733_vm0, %v1732_v0 }
  0x6e   :  { %1643 = vmatmul.mubr.msk.bf16.gmra.mxu0 %vm318_vm1, %v1723_v28 }
  0xce   :  { %v428_v29 = vpop.f32.mrf.mxu0  ;;  %v1919_v30 = vpop.f32.mrf.mxu1 }
  0xcf   :  { %v1956_v23 = vadd.f32 %v1948_v17, %v428_v29 }
  0xd0   :  { %v1596_v31 = vpop.f32.mrf.mxu0  ;;  %v1648_v32 = vpop.f32.mrf.mxu1 }
  0xd2   :  { %v431_v33 = vpop.f32.mrf.mxu0  ;;  %v1921_v34 = vpop.f32.mrf.mxu1 }
  0xd3   :  { %v1953_v20 = vadd.f32 %v1948_v17, %v431_v33 }
  0xd4   :  { %v1597_v35 = vpop.f32.mrf.mxu0  ;;  %v1649_v36 = vpop.f32.mrf.mxu1 }
  0xd5   :  { %v1088_v27 = vadd.f32 %v1953_v20, %v1956_v23 }
  0xd6   :  { %v436_v37 = vpop.f32.mrf.mxu0  ;;  %v1923_v38 = vpop.f32.mrf.mxu1 }
  0xd7   :  { %v1959_v24 = vadd.f32 %v1948_v17, %v436_v37 }
  0xd8   :  { %v1600_v39 = vpop.f32.mrf.mxu0  ;;  %v1652_v40 = vpop.f32.mrf.mxu1 }
  0xd9   :  { %v1089_v33 = vadd.f32 %v1088_v27, %v1959_v24 }
  0xda   :  { %v439_v41 = vpop.f32.mrf.mxu0  ;;  %v1925_v42 = vpop.f32.mrf.mxu1 }
  0xdb   :  { %v1966_v28 = vadd.f32 %v1948_v17, %v439_v41 }
  0xdc   :  { %v1601_v43 = vpop.f32.mrf.mxu0  ;;  %v1653_v44 = vpop.f32.mrf.mxu1 }
  0xdd   :  { %v1090_v37 = vadd.f32 %v1089_v33, %v1966_v28 }
  0xde   :  { %v444_v45 = vpop.f32.mrf.mxu0  ;;  %v1927_v46 = vpop.f32.mrf.mxu1 }
  0xdf   :  { %v1970_v35 = vadd.f32 %v1948_v17, %v444_v45 }
  0xe0   :  { %v1604_v47 = vpop.f32.mrf.mxu0  ;;  %v1656_v48 = vpop.f32.mrf.mxu1 }
  0xe1   :  { %v1091_v41 = vadd.f32 %v1090_v37, %v1970_v35 }
  0xe2   :  { %v447_v49 = vpop.f32.mrf.mxu0  ;;  %v1929_v50 = vpop.f32.mrf.mxu1 }
  0xe3   :  { %v1976_v39 = vadd.f32 %v1948_v17, %v447_v49 }
  0xe4   :  { %v1605_v51 = vpop.f32.mrf.mxu0  ;;  %v1657_v52 = vpop.f32.mrf.mxu1 }
  0xe5   :  { %v1092_v45 = vadd.f32 %v1091_v41, %v1976_v39 }
  0xe6   :  { %v452_v53 = vpop.f32.mrf.mxu0  ;;  %v1931_v54 = vpop.f32.mrf.mxu1 }
  0xe7   :  { %v1980_v44 = vadd.f32 %v1948_v17, %v452_v53 }
  0xe8   :  { %v1608_v55 = vpop.f32.mrf.mxu0  ;;  %v1660_v56 = vpop.f32.mrf.mxu1 }
  0xe9   :  { %v1093_v49 = vadd.f32 %v1092_v45, %v1980_v44 }
  0xea   :  { %v455_v57 = vpop.f32.mrf.mxu0  ;;  %v1933_v58 = vpop.f32.mrf.mxu1 }
  0xeb   :  { %v1986_v51 = vadd.f32 %v1948_v17, %v455_v57 }
  0xec   :  { %v1609_v59 = vpop.f32.mrf.mxu0  ;;  %v1661_v60 = vpop.f32.mrf.mxu1 }
  0xed   :  { %v1094_v53 = vadd.f32 %v1093_v49, %v1986_v51 }
  0xee   :  { %v460_v61 = vpop.f32.mrf.mxu0  ;;  %v1935_v62 = vpop.f32.mrf.mxu1 }
  0xef   :  { %v1990_v56 = vadd.f32 %v1948_v17, %v460_v61 }
  0xf0   :  { %v1612_v63 = vpop.f32.mrf.mxu0  ;;  %v1664_v0 = vpop.f32.mrf.mxu1 }
  0xf1   :  { %v1095_v57 = vadd.f32 %v1094_v53, %v1990_v56 }
  0xf2   :  { %v463_v1 = vpop.f32.mrf.mxu0  ;;  %v1937_v2 = vpop.f32.mrf.mxu1 }
  0xf3   :  { %v1996_v63 = vadd.f32 %v1948_v17, %v463_v1 }
  0xf4   :  { %v1613_v3 = vpop.f32.mrf.mxu0  ;;  %v1665_v4 = vpop.f32.mrf.mxu1 }
  0xf5   :  { %v1096_v61 = vadd.f32 %v1095_v57, %v1996_v63 }
  0xf6   :  { %v468_v5 = vpop.f32.mrf.mxu0  ;;  %v1939_v6 = vpop.f32.mrf.mxu1 }
  0xf7   :  { %v2000_v4 = vadd.f32 %v1948_v17, %v468_v5 }
  0xf8   :  { %v1616_v7 = vpop.f32.mrf.mxu0  ;;  %v1668_v8 = vpop.f32.mrf.mxu1 }
  0xf9   :  { %v1097_v1 = vadd.f32 %v1096_v61, %v2000_v4 }
  0xfa   :  { %v471_v9 = vpop.f32.mrf.mxu0  ;;  %v1941_v10 = vpop.f32.mrf.mxu1 }
  0xfc   :  { %v1617_v11 = vpop.f32.mrf.mxu0  ;;  %v1669_v12 = vpop.f32.mrf.mxu1 }
  0xfd   :  { %v2006_v11 = vadd.f32 %v1948_v17, %v471_v9 }
  0xfe   :  { %v476_v13 = vpop.f32.mrf.mxu0  ;;  %v1943_v14 = vpop.f32.mrf.mxu1 }
  0xff   :  { %v1098_v5 = vadd.f32 %v1097_v1, %v2006_v11 }
 0x100   :  { %v1620_v15 = vpop.f32.mrf.mxu0  ;;  %v1672_v16 = vpop.f32.mrf.mxu1 }
 0x101   :  { %v2010_v16 = vadd.f32 %v1948_v17, %v476_v13 }
 0x102   :  { %v479_v18 = vpop.f32.mrf.mxu0  ;;  %v1950_v19 = vpop.f32.mrf.mxu1 }
 0x103   :  { %v2016_v27 = vadd.f32 %v1948_v17, %v479_v18  ;;  %v1099_v9 = vadd.f32 %v1098_v5, %v2010_v16 }
 0x104   :  { %v1621_v21 = vpop.f32.mrf.mxu0  ;;  %v1673_v22 = vpop.f32.mrf.mxu1 }
 0x105   :  { %v1100_v13 = vadd.f32 %v1099_v9, %v2016_v27 }
 0x106   :  { %v484_v25 = vpop.f32.mrf.mxu0  ;;  %v1961_v26 = vpop.f32.mrf.mxu1 }
 0x107   :  { %v2020_v33 = vadd.f32 %v1948_v17, %v484_v25 }
 0x108   :  { %v1624_v31 = vpop.f32.mrf.mxu0  ;;  %v1676_v32 = vpop.f32.mrf.mxu1 }
 0x109   :  { %v1101_v18 = vadd.f32 %v1100_v13, %v2020_v33 }
 0x10a   :  { %v487_v29 = vpop.f32.mrf.mxu0  ;;  %v1972_v36 = vpop.f32.mrf.mxu1 }
 0x10c   :  { %v1625_v40 = vpop.f32.mrf.mxu0  ;;  %v1677_v43 = vpop.f32.mrf.mxu1 }
 0x10d   :  { %v2026_v43 = vadd.f32 %v1948_v17, %v487_v29 }
 0x10e   :  { %v492_v47 = vpop.f32.mrf.mxu0  ;;  %v1982_v48 = vpop.f32.mrf.mxu1 }
 0x10f   :  { %v1102_v25 = vadd.f32 %v1101_v18, %v2026_v43 }
 0x110   :  { %v1628_v52 = vpop.f32.mrf.mxu0  ;;  %v1680_v55 = vpop.f32.mrf.mxu1 }
 0x111   :  { %v2030_v52 = vadd.f32 %v1948_v17, %v492_v47 }
 0x112   :  { %v495_v59 = vpop.f32.mrf.mxu0  ;;  %v1992_v60 = vpop.f32.mrf.mxu1 }
 0x113   :  { %v2036_v53 = vadd.f32 %v1948_v17, %v495_v59  ;;  %v1103_v29 = vadd.f32 %v1102_v25, %v2030_v52 }
 0x114   :  { %v1629_v0 = vpop.f32.mrf.mxu0  ;;  %v1681_v3 = vpop.f32.mrf.mxu1 }
 0x115   :  { %v1104_v47 = vadd.f32 %v1103_v29, %v2036_v53 }
 0x116   :  { %v500_v7 = vpop.f32.mrf.mxu0  ;;  %v2002_v8 = vpop.f32.mrf.mxu1 }
 0x117   :  { %v2040_v57 = vadd.f32 %v1948_v17, %v500_v7 }
 0x118   :  { %v1632_v12 = vpop.f32.mrf.mxu0  ;;  %v1684_v15 = vpop.f32.mrf.mxu1 }
 0x119   :  { %v1105_v59 = vadd.f32 %v1104_v47, %v2040_v57 }
 0x11a   :  { %v503_v21 = vpop.f32.mrf.mxu0  ;;  %v2012_v22 = vpop.f32.mrf.mxu1 }
 0x11b   :  { %v2046_v15 = vadd.f32 %v1948_v17, %v503_v21 }
 0x11c   :  { %v1633_v31 = vpop.f32.mrf.mxu0  ;;  %v1685_v32 = vpop.f32.mrf.mxu1 }
 0x11d   :  { %v1106_v7 = vadd.f32 %v1105_v59, %v2046_v15 }
 0x11e   :  { %v508_v37 = vpop.f32.mrf.mxu0  ;;  %v2022_v40 = vpop.f32.mrf.mxu1 }
 0x11f   :  { %v2050_v31 = vadd.f32 %v1948_v17, %v508_v37 }
 0x120   :  { %v1636_v41 = vpop.f32.mrf.mxu0  ;;  %v1688_v45 = vpop.f32.mrf.mxu1 }
 0x121   :  { %v1107_v18 = vadd.f32 %v1106_v7, %v2050_v31  ;;  %v2075_v7 = vadd.f32 %v1948_v17, %v1919_v30 }
 0x122   :  { %v511_v55 = vpop.f32.mrf.mxu0  ;;  %v2032_v49 = vpop.f32.mrf.mxu1 }
 0x123   :  { %v2054_v13 = vadd.f32 %v1948_v17, %v511_v55  ;;  %2771 = vst [vmem:[#allocation2_spill] sm:$0xff] %v2075_v7 }
 0x124   :  { %v1637_v0 = vpop.f32.mrf.mxu0  ;;  %v1689_v3 = vpop.f32.mrf.mxu1 }
 0x125   :  { %v1108_v0 = vadd.f32 %v1107_v18, %v2054_v13  ;;  %v2085_v18 = vadd.f32 %v1948_v17, %v1923_v38 }
 0x126   :  { %v516_v61 = vpop.f32.mrf.mxu0  ;;  %v2042_v12 = vpop.f32.mrf.mxu1 }
 0x127   :  { %v2058_v21 = vadd.f32 %v1948_v17, %v516_v61  ;;  %2773 = vst [vmem:[#allocation4_spill] sm:$0xff] %v2085_v18 }
 0x128   :  { %v1640_v1 = vpop.f32.mrf.mxu0  ;;  %v1692_v5 = vpop.f32.mrf.mxu1 }
 0x129   :  { %v1109_v29 = vadd.f32 %v1108_v0, %v2058_v21  ;;  %v816_v0 = vadd.f32 %v1948_v17, %v1925_v42  ;;  %v821_v42 = vadd.f32 %v1948_v17, %v1935_v62  ;;  %v826_v62 = vadd.f32 %v1948_v17, %v1950_v19 }
 0x12a   :  { %v519_v32 = vpop.f32.mrf.mxu0  ;;  %v623_v9 = vpop.f32.mrf.mxu1  ;;  %v831_v19 = vadd.f32 %v1948_v17, %v2002_v8 }
 0x12b   :  { %v2062_v37 = vadd.f32 %v1948_v17, %v519_v32 }
 0x12c   :  { %v1641_v41 = vpop.f32.mrf.mxu0  ;;  %v1693_v45 = vpop.f32.mrf.mxu1 }
 0x12d   :  { %v1110_v1 = vadd.f32 %v1109_v29, %v2062_v37  ;;  %v2080_v41 = vadd.f32 %v1948_v17, %v1921_v34  ;;  %v818_v34 = vadd.f32 %v1948_v17, %v1929_v50  ;;  %v823_v50 = vadd.f32 %v1948_v17, %v1939_v6 }
 0x12e   :  { %v524_v25 = vpop.f32.mrf.mxu0  ;;  %v828_v6 = vadd.f32 %v1948_v17, %v1972_v36  ;;  %v833_v36 = vadd.f32 %v1948_v17, %v2022_v40 }
 0x12f   :  { %v2066_v47 = vadd.f32 %v1948_v17, %v524_v25  ;;  %2772 = vst [vmem:[#allocation3_spill] sm:$0xff] %v2080_v41 }
 0x130   :  { %v1644_v3 = vpop.f32.mrf.mxu0 }
 0x131   :  { %v1111_v59 = vadd.f32 %v1110_v1, %v2066_v47  ;;  %v817_v3 = vadd.f32 %v1948_v17, %v1927_v46  ;;  %v819_v1 = vadd.f32 %v1948_v17, %v1931_v54  ;;  %v822_v46 = vadd.f32 %v1948_v17, %v1937_v2 }
 0x132   :  { %v527_v55 = vpop.f32.mrf.mxu0  ;;  %v824_v54 = vadd.f32 %v1948_v17, %v1941_v10  ;;  %v827_v2 = vadd.f32 %v1948_v17, %v1961_v26  ;;  %v829_v10 = vadd.f32 %v1948_v17, %v1982_v48  ;;  %v832_v26 = vadd.f32 %v1948_v17, %v2012_v22 }
 0x133   :  { %v2071_v61 = vadd.f32 %v1948_v17, %v527_v55  ;;  %v834_v48 = vadd.f32 %v1948_v17, %v2032_v49 }
 0x134   :  { %v1645_v5 = vpop.f32.mrf.mxu0 }
 0x135   :  { %v1112_v32 = vadd.f32 %v1111_v59, %v2071_v61  ;;  %v820_v5 = vadd.f32 %v1948_v17, %v1933_v58  ;;  %v825_v58 = vadd.f32 %v1948_v17, %v1943_v14  ;;  %v830_v14 = vadd.f32 %v1948_v17, %v1992_v60 }
 0x137   :  { %v1113_v45 = vadd.f32 %v1112_v32, %v2075_v7 }
 0x139   :  { %v1114_v25 = vadd.f32 %v1113_v45, %v2080_v41 }
 0x13b   :  { %v1115_v30 = vadd.f32 %v1114_v25, %v2085_v18 }
 0x13d   :  { %v1116_v29 = vadd.f32 %v1115_v30, %v816_v0 }
 0x13f   :  { %v1117_v55 = vadd.f32 %v1116_v29, %v817_v3 }
 0x141   :  { %v1118_v38 = vadd.f32 %v1117_v55, %v818_v34 }
 0x143   :  { %v1119_v59 = vadd.f32 %v1118_v38, %v819_v1 }
 0x145   :  { %v1120_v32 = vadd.f32 %v1119_v59, %v820_v5 }
 0x147   :  { %v1121_v45 = vadd.f32 %v1120_v32, %v821_v42 }
 0x149   :  { %v1122_v25 = vadd.f32 %v1121_v45, %v822_v46 }
 0x14b   :  { %v1123_v30 = vadd.f32 %v1122_v25, %v823_v50 }
 0x14d   :  { %v1124_v29 = vadd.f32 %v1123_v30, %v824_v54 }
 0x14f   :  { %v1125_v55 = vadd.f32 %v1124_v29, %v825_v58 }
 0x151   :  { %v1126_v38 = vadd.f32 %v1125_v55, %v826_v62  ;;  %v2128_v55 = vadd.f32 %v1948_v17, %v623_v9 }
 0x153   :  { %v1127_v59 = vadd.f32 %v1126_v38, %v827_v2  ;;  %v835_v38 = vadd.f32 %v1948_v17, %v2042_v12 }
 0x155   :  { %v1128_v32 = vadd.f32 %v1127_v59, %v828_v6  ;;  %v1087_v59 = vmul.f32 0.0, %v2128_v55 }
 0x157   :  { %v1129_v45 = vadd.f32 %v1128_v32, %v829_v10 }
 0x159   :  { %v1130_v25 = vadd.f32 %v1129_v45, %v830_v14 }
 0x15b   :  { %v1131_v30 = vadd.f32 %v1130_v25, %v831_v19 }
 0x15d   :  { %v1132_v29 = vadd.f32 %v1131_v30, %v832_v26 }
 0x15f   :  { %v1133_v60 = vadd.f32 %v1132_v29, %v833_v36 }
 0x161   :  { %v1134_v8 = vadd.f32 %v1133_v60, %v834_v48 }
 0x163   :  { %v1135_v32 = vadd.f32 %v1134_v8, %v835_v38 }
 0x165   :  { %v1136_v22 = vadd.f32 %v1135_v32, %v1087_v59 }
 0x167   :  { %v1137_v45 = vrot.slane %v1136_v22, 4 }
 0x169   :  { %v1138_v25 = vadd.f32 %v1137_v45, %v1136_v22 }
 0x16b   :  { %v1139_v18 = vrot.slane %v1138_v25, 2 }
 0x16d   :  { %v1140_v40 = vadd.f32 %v1139_v18, %v1138_v25 }
 0x16f   :  { %v1141_v30 = vrot.slane %v1140_v40, 1 }
 0x171   :  { %v1142_v41 = vadd.f32 %v1141_v30, %v1140_v40 }
 0x173   :  { %v2133_v7 = vmul.f32 0.0025510204, %v1142_v41 }
 0x175   :  { %v2136_v49 = vsub.f32 %v816_v0, %v2133_v7  ;;  %v2139_v9 = vsub.f32 %v817_v3, %v2133_v7  ;;  %v2142_v17 = vsub.f32 %v818_v34, %v2133_v7  ;;  %v2145_v12 = vsub.f32 %v819_v1, %v2133_v7 }
 0x176   :  { %v2148_v29 = vsub.f32 %v820_v5, %v2133_v7  ;;  %v2151_v18 = vsub.f32 %v821_v42, %v2133_v7  ;;  %v2154_v41 = vsub.f32 %v822_v46, %v2133_v7  ;;  %v2157_v0 = vsub.f32 %v823_v50, %v2133_v7 }
 0x177   :  { %v2160_v3 = vsub.f32 %v824_v54, %v2133_v7  ;;  %v2163_v34 = vsub.f32 %v825_v58, %v2133_v7  ;;  %v2166_v1 = vsub.f32 %v826_v62, %v2133_v7  ;;  %v2169_v5 = vsub.f32 %v827_v2, %v2133_v7 }
 0x178   :  { %v2172_v42 = vsub.f32 %v828_v6, %v2133_v7  ;;  %v2175_v46 = vsub.f32 %v829_v10, %v2133_v7  ;;  %v2178_v50 = vsub.f32 %v830_v14, %v2133_v7  ;;  %v2181_v54 = vsub.f32 %v831_v19, %v2133_v7 }
 0x179   :  { %v2184_v58 = vsub.f32 %v832_v26, %v2133_v7  ;;  %v2187_v62 = vsub.f32 %v833_v36, %v2133_v7  ;;  %v2190_v2 = vsub.f32 %v834_v48, %v2133_v7  ;;  %v2193_v6 = vsub.f32 %v835_v38, %v2133_v7 }
 0x17a   :  { %2774 = vst [vmem:[#allocation5_spill] sm:$0xff] %v2178_v50  ;;  %2775 = vst [vmem:[#allocation6_spill] sm:$0xff] %v2181_v54  ;;  %v2197_v10 = vsub.f32 %v1956_v23, %v2133_v7  ;;  %v2201_v14 = vsub.f32 %v1953_v20, %v2133_v7  ;;  %v2205_v19 = vsub.f32 %v1959_v24, %v2133_v7 }
 0x17b   :  { %2776 = vst [vmem:[#allocation7_spill] sm:$0xff] %v2184_v58  ;;  %2777 = vst [vmem:[#allocation8_spill] sm:$0xff] %v2187_v62  ;;  %v2213_v48 = vsub.f32 %v1966_v28, %v2133_v7  ;;  %v2217_v23 = vsub.f32 %v1970_v35, %v2133_v7  ;;  %v2223_v24 = vsub.f32 %v1976_v39, %v2133_v7 }
 0x17c   :  { %2778 = vst [vmem:[#allocation9_spill] sm:$0xff] %v2190_v2  ;;  %v1244_v26 = vmul.f32 %v2197_v10, %v2197_v10  ;;  %v1245_v36 = vmul.f32 %v2201_v14, %v2201_v14  ;;  %v1246_v20 = vmul.f32 %v2205_v19, %v2205_v19  ;;  %v2229_v28 = vsub.f32 %v1980_v44, %v2133_v7 }
 0x17d   :  { %v1247_v38 = vmul.f32 %v2213_v48, %v2213_v48  ;;  %v1248_v35 = vmul.f32 %v2217_v23, %v2217_v23  ;;  %v2235_v32 = vsub.f32 %v1986_v51, %v2133_v7  ;;  %v1249_v39 = vmul.f32 %v2223_v24, %v2223_v24 }
 0x17e   :  { %v1294_v60 = vadd.f32 %v1245_v36, %v1244_v26  ;;  %v2241_v45 = vsub.f32 %v1990_v56, %v2133_v7  ;;  %v1250_v44 = vmul.f32 %v2229_v28, %v2229_v28  ;;  %v2247_v40 = vsub.f32 %v1996_v63, %v2133_v7 }
 0x17f   :  { %v1251_v51 = vmul.f32 %v2235_v32, %v2235_v32  ;;  %v2253_v26 = vsub.f32 %v2000_v4, %v2133_v7 }
 0x180   :  { %v1295_v8 = vadd.f32 %v1294_v60, %v1246_v20  ;;  %v1252_v56 = vmul.f32 %v2241_v45, %v2241_v45  ;;  %v2259_v20 = vsub.f32 %v2006_v11, %v2133_v7  ;;  %v1253_v63 = vmul.f32 %v2247_v40, %v2247_v40 }
 0x181   :  { %v1254_v4 = vmul.f32 %v2253_v26, %v2253_v26 }
 0x182   :  { %v1296_v59 = vadd.f32 %v1295_v8, %v1247_v38  ;;  %v2265_v38 = vsub.f32 %v2010_v16, %v2133_v7  ;;  %v1255_v11 = vmul.f32 %v2259_v20, %v2259_v20 }
 0x184   :  { %v1297_v22 = vadd.f32 %v1296_v59, %v1248_v35  ;;  %v2271_v35 = vsub.f32 %v2016_v27, %v2133_v7  ;;  %v1256_v16 = vmul.f32 %v2265_v38, %v2265_v38 }
 0x186   :  { %v1298_v25 = vadd.f32 %v1297_v22, %v1249_v39  ;;  %v2277_v39 = vsub.f32 %v2020_v33, %v2133_v7  ;;  %v1257_v27 = vmul.f32 %v2271_v35, %v2271_v35 }
 0x188   :  { %v1299_v30 = vadd.f32 %v1298_v25, %v1250_v44  ;;  %v2283_v44 = vsub.f32 %v2026_v43, %v2133_v7  ;;  %v1258_v33 = vmul.f32 %v2277_v39, %v2277_v39 }
 0x18a   :  { %v1300_v36 = vadd.f32 %v1299_v30, %v1251_v51  ;;  %v2289_v51 = vsub.f32 %v2030_v52, %v2133_v7  ;;  %v1259_v43 = vmul.f32 %v2283_v44, %v2283_v44 }
 0x18c   :  { %v1301_v60 = vadd.f32 %v1300_v36, %v1252_v56  ;;  %v2295_v56 = vsub.f32 %v2036_v53, %v2133_v7  ;;  %v1260_v52 = vmul.f32 %v2289_v51, %v2289_v51 }
 0x18e   :  { %v1302_v8 = vadd.f32 %v1301_v60, %v1253_v63  ;;  %v2301_v63 = vsub.f32 %v2040_v57, %v2133_v7  ;;  %v1261_v53 = vmul.f32 %v2295_v56, %v2295_v56 }
 0x190   :  { %v1303_v59 = vadd.f32 %v1302_v8, %v1254_v4  ;;  %v2307_v4 = vsub.f32 %v2046_v15, %v2133_v7  ;;  %v1262_v57 = vmul.f32 %v2301_v63, %v2301_v63 }
 0x192   :  { %v1304_v22 = vadd.f32 %v1303_v59, %v1255_v11  ;;  %v2313_v11 = vsub.f32 %v2050_v31, %v2133_v7  ;;  %v1263_v15 = vmul.f32 %v2307_v4, %v2307_v4 }
 0x194   :  { %v1305_v25 = vadd.f32 %v1304_v22, %v1256_v16  ;;  %v2319_v16 = vsub.f32 %v2054_v13, %v2133_v7  ;;  %v1264_v31 = vmul.f32 %v2313_v11, %v2313_v11 }
 0x196   :  { %v1306_v30 = vadd.f32 %v1305_v25, %v1257_v27  ;;  %v2325_v27 = vsub.f32 %v2058_v21, %v2133_v7  ;;  %v1265_v13 = vmul.f32 %v2319_v16, %v2319_v16 }
 0x198   :  { %v1307_v36 = vadd.f32 %v1306_v30, %v1258_v33  ;;  %v2331_v33 = vsub.f32 %v2062_v37, %v2133_v7  ;;  %v1266_v21 = vmul.f32 %v2325_v27, %v2325_v27 }
 0x19a   :  { %v1308_v60 = vadd.f32 %v1307_v36, %v1259_v43  ;;  %v2337_v43 = vsub.f32 %v2066_v47, %v2133_v7  ;;  %v1267_v37 = vmul.f32 %v2331_v33, %v2331_v33 }
 0x19c   :  { %v1309_v8 = vadd.f32 %v1308_v60, %v1260_v52  ;;  %v2343_v52 = vsub.f32 %v2071_v61, %v2133_v7  ;;  %v1268_v47 = vmul.f32 %v2337_v43, %v2337_v43 }
 0x19e   :  { %v1310_v59 = vadd.f32 %v1309_v8, %v1261_v53  ;;  %v2779_v53 = vld [vmem:[#allocation2_spill] sm:$0xff]  ;;  %v1269_v61 = vmul.f32 %v2343_v52, %v2343_v52 }
 0x19f   :  { %v2349_v8 = vsub.f32 %v2779_v53, %v2133_v7  ;;  %v1273_v53 = vmul.f32 %v2136_v49, %v2136_v49 }
 0x1a0   :  { %v1311_v22 = vadd.f32 %v1310_v59, %v1262_v57  ;;  %v2780_v59 = vld [vmem:[#allocation3_spill] sm:$0xff] }
 0x1a2   :  { %v1312_v25 = vadd.f32 %v1311_v22, %v1263_v15  ;;  %v2355_v15 = vsub.f32 %v2780_v59, %v2133_v7 }
 0x1a4   :  { %v1313_v30 = vadd.f32 %v1312_v25, %v1264_v31  ;;  %v2781_v31 = vld [vmem:[#allocation4_spill] sm:$0xff] }
 0x1a5   :  { %v2361_v25 = vsub.f32 %v2781_v31, %v2133_v7  ;;  %v1275_v31 = vmul.f32 %v2142_v17, %v2142_v17 }
 0x1a6   :  { %v1314_v36 = vadd.f32 %v1313_v30, %v1265_v13  ;;  %v1270_v13 = vmul.f32 %v2349_v8, %v2349_v8 }
 0x1a8   :  { %v1315_v60 = vadd.f32 %v1314_v36, %v1266_v21  ;;  %v1271_v21 = vmul.f32 %v2355_v15, %v2355_v15 }
 0x1aa   :  { %v1316_v57 = vadd.f32 %v1315_v60, %v1267_v37  ;;  %v1272_v37 = vmul.f32 %v2361_v25, %v2361_v25 }
 0x1ac   :  { %v1317_v22 = vadd.f32 %v1316_v57, %v1268_v47  ;;  %v1274_v57 = vmul.f32 %v2139_v9, %v2139_v9 }
 0x1ae   :  { %v1318_v30 = vadd.f32 %v1317_v22, %v1269_v61  ;;  %v1276_v22 = vmul.f32 %v2145_v12, %v2145_v12 }
 0x1b0   :  { %v1319_v36 = vadd.f32 %v1318_v30, %v1270_v13  ;;  %v1277_v30 = vmul.f32 %v2148_v29, %v2148_v29 }
 0x1b2   :  { %v1320_v60 = vadd.f32 %v1319_v36, %v1271_v21  ;;  %v1278_v36 = vmul.f32 %v2151_v18, %v2151_v18 }
 0x1b4   :  { %v1321_v47 = vadd.f32 %v1320_v60, %v1272_v37  ;;  %v1279_v60 = vmul.f32 %v2154_v41, %v2154_v41 }
 0x1b6   :  { %v1322_v59 = vadd.f32 %v1321_v47, %v1273_v53  ;;  %v1280_v47 = vmul.f32 %v2157_v0, %v2157_v0 }
 0x1b8   :  { %v1323_v61 = vadd.f32 %v1322_v59, %v1274_v57  ;;  %v1281_v59 = vmul.f32 %v2160_v3, %v2160_v3 }
 0x1ba   :  { %v1324_v13 = vadd.f32 %v1323_v61, %v1275_v31  ;;  %v1282_v61 = vmul.f32 %v2163_v34, %v2163_v34 }
 0x1bc   :  { %v1325_v21 = vadd.f32 %v1324_v13, %v1276_v22  ;;  %v1283_v13 = vmul.f32 %v2166_v1, %v2166_v1 }
 0x1be   :  { %v1326_v37 = vadd.f32 %v1325_v21, %v1277_v30  ;;  %v1284_v21 = vmul.f32 %v2169_v5, %v2169_v5 }
 0x1c0   :  { %v1327_v53 = vadd.f32 %v1326_v37, %v1278_v36  ;;  %v1285_v37 = vmul.f32 %v2172_v42, %v2172_v42 }
 0x1c2   :  { %v1328_v57 = vadd.f32 %v1327_v53, %v1279_v60  ;;  %v1286_v53 = vmul.f32 %v2175_v46, %v2175_v46 }
 0x1c4   :  { %v1329_v31 = vadd.f32 %v1328_v57, %v1280_v47  ;;  %v1287_v57 = vmul.f32 %v2178_v50, %v2178_v50 }
 0x1c6   :  { %v1330_v22 = vadd.f32 %v1329_v31, %v1281_v59  ;;  %v1288_v31 = vmul.f32 %v2181_v54, %v2181_v54 }
 0x1c8   :  { %v1331_v30 = vadd.f32 %v1330_v22, %v1282_v61  ;;  %v2403_v22 = vsub.f32 %v2128_v55, %v2133_v7 }
 0x1ca   :  { %v1332_v36 = vadd.f32 %v1331_v30, %v1283_v13  ;;  %2782 = vst [vmem:[#allocation2_spill] sm:$0xff] %v2403_v22  ;;  %v1289_v13 = vmul.f32 %v2184_v58, %v2184_v58 }
 0x1cc   :  { %v1333_v60 = vadd.f32 %v1332_v36, %v1284_v21  ;;  %v1290_v21 = vmul.f32 %v2187_v62, %v2187_v62 }
 0x1ce   :  { %v1334_v47 = vadd.f32 %v1333_v60, %v1285_v37  ;;  %v1243_v37 = vmul.f32 0.0, %v2403_v22  ;;  %v1291_v60 = vmul.f32 %v2190_v2, %v2190_v2 }
 0x1d0   :  { %v1335_v59 = vadd.f32 %v1334_v47, %v1286_v53  ;;  %v1292_v47 = vmul.f32 %v2193_v6, %v2193_v6  ;;  %v1293_v7 = vmul.f32 %v1243_v37, %v1243_v37 }
 0x1d2   :  { %v1336_v61 = vadd.f32 %v1335_v59, %v1287_v57 }
 0x1d4   :  { %v1337_v30 = vadd.f32 %v1336_v61, %v1288_v31 }
 0x1d6   :  { %v1338_v36 = vadd.f32 %v1337_v30, %v1289_v13 }
 0x1d8   :  { %v1339_v53 = vadd.f32 %v1338_v36, %v1290_v21 }
 0x1da   :  { %v1340_v57 = vadd.f32 %v1339_v53, %v1291_v60 }
 0x1dc   :  { %v1341_v55 = vadd.f32 %v1340_v57, %v1292_v47 }
 0x1de   :  { %v1342_v59 = vadd.f32 %v1341_v55, %v1293_v7 }
 0x1e0   :  { %v1343_v54 = vrot.slane %v1342_v59, 4 }
 0x1e2   :  { %v1344_v58 = vadd.f32 %v1343_v54, %v1342_v59 }
 0x1e4   :  { %v1345_v31 = vrot.slane %v1344_v58, 2 }
 0x1e6   :  { %v1346_v61 = vadd.f32 %v1345_v31, %v1344_v58 }
 0x1e8   :  { %v1347_v50 = vrot.slane %v1346_v61, 1 }
 0x1ea   :  { %v1348_v62 = vadd.f32 %v1347_v50, %v1346_v61 }
 0x1ec   :  { %v1349_v13 = vmul.f32 0.0025510204, %v1348_v62 }
 0x1ee   :  { %v1350_v30 = vadd.f32 1e-05, %v1349_v13 }
 0x1f0   :  { %1730 = vrsqrt.f32 %v1350_v30 }
 0x1fd   :  { %v1731_v22 = vpop.eup %1730 }
 0x1fe   :  { %v1352_v2 = vmul.f32 %v1731_v22, %v2197_v10  ;;  %v1353_v21 = vmul.f32 %v1731_v22, %v2201_v14  ;;  %v2417_v36 = vmul.f32 %v1731_v22, %v2205_v19  ;;  %v2420_v37 = vmul.f32 %v1731_v22, %v2213_v48 }
 0x1ff   :  { %v2423_v54 = vmul.f32 %v1731_v22, %v2217_v23  ;;  %v2426_v58 = vmul.f32 %v1731_v22, %v2223_v24  ;;  %v2429_v50 = vmul.f32 %v1731_v22, %v2229_v28  ;;  %v2432_v62 = vmul.f32 %v1731_v22, %v2235_v32 }
 0x200   :  { %v2435_v10 = vmul.f32 %v1731_v22, %v2241_v45  ;;  %v2438_v14 = vmul.f32 %v1731_v22, %v2247_v40  ;;  %v2441_v19 = vmul.f32 %v1731_v22, %v2253_v26  ;;  %v2444_v48 = vmul.f32 %v1731_v22, %v2259_v20 }
 0x201   :  { %v2447_v23 = vmul.f32 %v1731_v22, %v2265_v38  ;;  %v2450_v24 = vmul.f32 %v1731_v22, %v2271_v35  ;;  %v2453_v28 = vmul.f32 %v1731_v22, %v2277_v39  ;;  %v2456_v32 = vmul.f32 %v1731_v22, %v2283_v44 }
 0x202   :  { %v2459_v45 = vmul.f32 %v1731_v22, %v2289_v51  ;;  %v2462_v40 = vmul.f32 %v1731_v22, %v2295_v56  ;;  %v2465_v26 = vmul.f32 %v1731_v22, %v2301_v63  ;;  %v2468_v20 = vmul.f32 %v1731_v22, %v2307_v4 }
 0x203   :  { %v2471_v38 = vmul.f32 %v1731_v22, %v2313_v11  ;;  %v2474_v35 = vmul.f32 %v1731_v22, %v2319_v16  ;;  %v2477_v39 = vmul.f32 %v1731_v22, %v2325_v27  ;;  %v2480_v44 = vmul.f32 %v1731_v22, %v2331_v33 }
 0x204   :  { %v2483_v51 = vmul.f32 %v1731_v22, %v2337_v43  ;;  %v2486_v56 = vmul.f32 %v1731_v22, %v2343_v52  ;;  %v2489_v63 = vmul.f32 %v1731_v22, %v2349_v8  ;;  %v2492_v4 = vmul.f32 %v1731_v22, %v2355_v15 }
 0x205   :  { %v2495_v11 = vmul.f32 %v1731_v22, %v2361_v25  ;;  %v2498_v16 = vmul.f32 %v1731_v22, %v2136_v49  ;;  %v2501_v27 = vmul.f32 %v1731_v22, %v2139_v9  ;;  %v2504_v33 = vmul.f32 %v1731_v22, %v2142_v17 }
 0x206   :  { %v2507_v43 = vmul.f32 %v1731_v22, %v2145_v12  ;;  %v2510_v52 = vmul.f32 %v1731_v22, %v2148_v29  ;;  %v2513_v8 = vmul.f32 %v1731_v22, %v2151_v18  ;;  %v2516_v15 = vmul.f32 %v1731_v22, %v2154_v41 }
 0x207   :  { %v2519_v49 = vmul.f32 %v1731_v22, %v2157_v0  ;;  %v2522_v9 = vmul.f32 %v1731_v22, %v2160_v3  ;;  %v2525_v17 = vmul.f32 %v1731_v22, %v2163_v34  ;;  %v2528_v12 = vmul.f32 %v1731_v22, %v2166_v1  ;;  %v2783_v0 = vld [vmem:[#allocation5_spill] sm:$0xff]  ;;  %v2784_v3 = vld [vmem:[#allocation6_spill] sm:$0xff]  ;;  %v2785_v34 = vld [vmem:[#allocation7_spill] sm:$0xff] }
 0x208   :  { %v2531_v29 = vmul.f32 %v1731_v22, %v2169_v5  ;;  %v2534_v18 = vmul.f32 %v1731_v22, %v2172_v42  ;;  %v2537_v41 = vmul.f32 %v1731_v22, %v2175_v46  ;;  %v2540_v25 = vmul.f32 %v1731_v22, %v2783_v0  ;;  %v2786_v1 = vld [vmem:[#allocation8_spill] sm:$0xff]  ;;  %v2787_v5 = vld [vmem:[#allocation9_spill] sm:$0xff]  ;;  %v2788_v46 = vld [vmem:[#allocation2_spill] sm:$0xff] }
 0x209   :  { %v2543_v60 = vmul.f32 %v1731_v22, %v2784_v3  ;;  %v2546_v53 = vmul.f32 %v1731_v22, %v2785_v34  ;;  %v2549_v47 = vmul.f32 %v1731_v22, %v2786_v1  ;;  %v2552_v57 = vmul.f32 %v1731_v22, %v2787_v5 }
 0x20a   :  { %v2555_v42 = vmul.f32 %v1731_v22, %v2193_v6  ;;  %v2558_v7 = vmul.f32 %v1731_v22, %v2788_v46  ;;  %v1402_v55 = vmax.f32 %v1352_v2, 0.0  ;;  %v1403_v59 = vmax.f32 %v1353_v21, 0.0 }
 0x20b   :  { %v1404_v31 = vmax.f32 %v2417_v36, 0.0  ;;  %v1405_v61 = vmax.f32 %v2420_v37, 0.0  ;;  %v1406_v13 = vmax.f32 %v2423_v54, 0.0  ;;  %v1407_v30 = vmax.f32 %v2426_v58, 0.0 }
 0x20c   :  { %v1408_v0 = vmax.f32 %v2429_v50, 0.0  ;;  %v1409_v3 = vmax.f32 %v2432_v62, 0.0  ;;  %v1410_v6 = vmax.f32 %v2435_v10, 0.0  ;;  %v1411_v34 = vmax.f32 %v2438_v14, 0.0  ;;  %1452 = vst [vmem:[%s2761_s3] sm:$0xff] %v1402_v55  ;;  %1453 = vst [vmem:[%s2761_s3 + $0x8] sm:$0xff] %v1403_v59 }
 0x20d   :  { %v1412_v2 = vmax.f32 %v2441_v19, 0.0  ;;  %v1413_v22 = vmax.f32 %v2444_v48, 0.0  ;;  %v1414_v21 = vmax.f32 %v2447_v23, 0.0  ;;  %v1415_v36 = vmax.f32 %v2450_v24, 0.0  ;;  %1454 = vst [vmem:[%s2761_s3 + $0x10] sm:$0xff] %v1404_v31  ;;  %1455 = vst [vmem:[%s2761_s3 + $0x18] sm:$0xff] %v1405_v61 }
 0x20e   :  { %1456 = vst [vmem:[%s2761_s3 + $0x20] sm:$0xff] %v1406_v13  ;;  %1457 = vst [vmem:[%s2761_s3 + $0x28] sm:$0xff] %v1407_v30  ;;  %v1416_v37 = vmax.f32 %v2453_v28, 0.0  ;;  %v1417_v54 = vmax.f32 %v2456_v32, 0.0  ;;  %v1418_v58 = vmax.f32 %v2459_v45, 0.0  ;;  %v1419_v50 = vmax.f32 %v2462_v40, 0.0 }
 0x20f   :  { %1458 = vst [vmem:[%s2761_s3 + $0x30] sm:$0xff] %v1408_v0  ;;  %1459 = vst [vmem:[%s2761_s3 + $0x38] sm:$0xff] %v1409_v3  ;;  %v1420_v62 = vmax.f32 %v2465_v26, 0.0  ;;  %v1421_v10 = vmax.f32 %v2468_v20, 0.0  ;;  %v1422_v14 = vmax.f32 %v2471_v38, 0.0  ;;  %v1423_v19 = vmax.f32 %v2474_v35, 0.0 }
 0x210   :  { %1460 = vst [vmem:[%s2761_s3 + $0x40] sm:$0xff] %v1410_v6  ;;  %1461 = vst [vmem:[%s2761_s3 + $0x48] sm:$0xff] %v1411_v34  ;;  %v1424_v48 = vmax.f32 %v2477_v39, 0.0  ;;  %v1425_v23 = vmax.f32 %v2480_v44, 0.0  ;;  %v1426_v24 = vmax.f32 %v2483_v51, 0.0  ;;  %v1427_v28 = vmax.f32 %v2486_v56, 0.0 }
 0x211   :  { %1462 = vst [vmem:[%s2761_s3 + $0x50] sm:$0xff] %v1412_v2  ;;  %1463 = vst [vmem:[%s2761_s3 + $0x58] sm:$0xff] %v1413_v22  ;;  %v1428_v32 = vmax.f32 %v2489_v63, 0.0  ;;  %v1429_v45 = vmax.f32 %v2492_v4, 0.0  ;;  %v1430_v40 = vmax.f32 %v2495_v11, 0.0  ;;  %v1431_v26 = vmax.f32 %v2498_v16, 0.0 }
 0x212   :  { %1464 = vst [vmem:[%s2761_s3 + $0x60] sm:$0xff] %v1414_v21  ;;  %1465 = vst [vmem:[%s2761_s3 + $0x68] sm:$0xff] %v1415_v36  ;;  %v1432_v20 = vmax.f32 %v2501_v27, 0.0  ;;  %v1433_v38 = vmax.f32 %v2504_v33, 0.0  ;;  %v1434_v35 = vmax.f32 %v2507_v43, 0.0  ;;  %v1435_v39 = vmax.f32 %v2510_v52, 0.0 }
 0x213   :  { %1466 = vst [vmem:[%s2761_s3 + $0x70] sm:$0xff] %v1416_v37  ;;  %1467 = vst [vmem:[%s2761_s3 + $0x78] sm:$0xff] %v1417_v54  ;;  %v1436_v44 = vmax.f32 %v2513_v8, 0.0  ;;  %v1437_v51 = vmax.f32 %v2516_v15, 0.0  ;;  %v1438_v56 = vmax.f32 %v2519_v49, 0.0  ;;  %v1439_v63 = vmax.f32 %v2522_v9, 0.0 }
 0x214   :  { %1468 = vst [vmem:[%s2761_s3 + $0x80] sm:$0xff] %v1418_v58  ;;  %1469 = vst [vmem:[%s2761_s3 + $0x88] sm:$0xff] %v1419_v50  ;;  %v1440_v4 = vmax.f32 %v2525_v17, 0.0  ;;  %v1441_v11 = vmax.f32 %v2528_v12, 0.0  ;;  %v1442_v16 = vmax.f32 %v2531_v29, 0.0  ;;  %v1443_v27 = vmax.f32 %v2534_v18, 0.0 }
 0x215   :  { %1470 = vst [vmem:[%s2761_s3 + $0x90] sm:$0xff] %v1420_v62  ;;  %1471 = vst [vmem:[%s2761_s3 + $0x98] sm:$0xff] %v1421_v10  ;;  %v1444_v33 = vmax.f32 %v2537_v41, 0.0  ;;  %v1445_v43 = vmax.f32 %v2540_v25, 0.0  ;;  %v1446_v52 = vmax.f32 %v2543_v60, 0.0  ;;  %v1447_v8 = vmax.f32 %v2546_v53, 0.0 }
 0x216   :  { %1472 = vst [vmem:[%s2761_s3 + $0xa0] sm:$0xff] %v1422_v14  ;;  %1473 = vst [vmem:[%s2761_s3 + $0xa8] sm:$0xff] %v1423_v19  ;;  %v1448_v15 = vmax.f32 %v2549_v47, 0.0  ;;  %v1449_v49 = vmax.f32 %v2552_v57, 0.0  ;;  %v1450_v9 = vmax.f32 %v2555_v42, 0.0  ;;  %v1451_v17 = vmax.f32 %v2558_v7, 0.0 }
 0x217   :  { %1474 = vst [vmem:[%s2761_s3 + $0xb0] sm:$0xff] %v1424_v48  ;;  %1475 = vst [vmem:[%s2761_s3 + $0xb8] sm:$0xff] %v1425_v23 }
 0x218   :  { %1476 = vst [vmem:[%s2761_s3 + $0xc0] sm:$0xff] %v1426_v24  ;;  %1477 = vst [vmem:[%s2761_s3 + $0xc8] sm:$0xff] %v1427_v28 }
 0x219   :  { %1478 = vst [vmem:[%s2761_s3 + $0xd0] sm:$0xff] %v1428_v32  ;;  %1479 = vst [vmem:[%s2761_s3 + $0xd8] sm:$0xff] %v1429_v45 }
 0x21a   :  { %1480 = vst [vmem:[%s2761_s3 + $0xe0] sm:$0xff] %v1430_v40  ;;  %1481 = vst [vmem:[%s2761_s3 + $0xe8] sm:$0xff] %v1431_v26 }
 0x21b   :  { %1482 = vst [vmem:[%s2761_s3 + $0xf0] sm:$0xff] %v1432_v20  ;;  %1483 = vst [vmem:[%s2761_s3 + $0xf8] sm:$0xff] %v1433_v38 }
 0x21c   :  { %1484 = vst [vmem:[%s2761_s3 + $0x100] sm:$0xff] %v1434_v35  ;;  %1485 = vst [vmem:[%s2761_s3 + $0x108] sm:$0xff] %v1435_v39 }
 0x21d   :  { %1486 = vst [vmem:[%s2761_s3 + $0x110] sm:$0xff] %v1436_v44  ;;  %1487 = vst [vmem:[%s2761_s3 + $0x118] sm:$0xff] %v1437_v51 }
 0x21e   :  { %1488 = vst [vmem:[%s2761_s3 + $0x120] sm:$0xff] %v1438_v56  ;;  %1489 = vst [vmem:[%s2761_s3 + $0x128] sm:$0xff] %v1439_v63 }
 0x21f   :  { %1490 = vst [vmem:[%s2761_s3 + $0x130] sm:$0xff] %v1440_v4  ;;  %1491 = vst [vmem:[%s2761_s3 + $0x138] sm:$0xff] %v1441_v11 }
 0x220   :  { %1492 = vst [vmem:[%s2761_s3 + $0x140] sm:$0xff] %v1442_v16  ;;  %1493 = vst [vmem:[%s2761_s3 + $0x148] sm:$0xff] %v1443_v27 }
 0x221   :  { %1494 = vst [vmem:[%s2761_s3 + $0x150] sm:$0xff] %v1444_v33  ;;  %1495 = vst [vmem:[%s2761_s3 + $0x158] sm:$0xff] %v1445_v43 }
 0x222   :  { %1496 = vst [vmem:[%s2761_s3 + $0x160] sm:$0xff] %v1446_v52  ;;  %1497 = vst [vmem:[%s2761_s3 + $0x168] sm:$0xff] %v1447_v8 }
 0x223   :  { %1498 = vst [vmem:[%s2761_s3 + $0x170] sm:$0xff] %v1448_v15  ;;  %1499 = vst [vmem:[%s2761_s3 + $0x178] sm:$0xff] %v1449_v49 }
 0x224   :  { %1500 = vst [vmem:[%s2761_s3 + $0x180] sm:$0xff] %v1450_v9  ;;  %1501 = vst [vmem:[%s2761_s3 + $0x188] sm:$0xff] %v1451_v17 }

// kernel: encoder_block_forward.4
= control target key start
LH: loop header
LB: loop body
LE: loop exit
PB: predicated region body
PF: predicated region fallthrough
CT: control target
= control target key end

     0   :  { %v1904_v0 = vmov 0   ;;  %vm577_vm0 = vcmask 261120   ;;  %s2754_s1 = inlined_call_operand.vmem [shape: bf16[288,128], index: 1, kind: input, shape index: {}]   ;;  %s2755_s0 = inlined_call_operand.vmem [shape: bf16[288,288], index: 0, kind: input, shape index: {}]   ;;  %s2756_s2 = inlined_call_operand.vmem [shape: f32[1,128], index: 2, kind: input, shape index: {}]   ;;  %s2757_s3 = inlined_call_operand.vmem [shape: f32[288,128], index: 3, kind: output, shape index: {}]  }
   0x1   :  { %632 = vmatprep.subr.bf16.mxu0 %v1904_v0  ;;  %1778 = vmatprep.subr.bf16.mxu1 %v1904_v0  ;;  %v1812_v1 = vld [vmem:[%s2754_s1 + $0x38] sm:$0xff]   ;;  %v1813_v2 = vld [vmem:[%s2754_s1 + $0x30] sm:$0xff]   ;;  %v1814_v3 = vld [vmem:[%s2754_s1 + $0x28] sm:$0xff]  }
   0x2   :  { %633 = vmatpush1.bf16.msra.mxu0 %v1812_v1  ;;  %1794 = vmatpush1.bf16.msra.mxu1 %v1812_v1  ;;  %v1815_v4 = vld [vmem:[%s2754_s1 + $0x20] sm:$0xff]   ;;  %v1816_v5 = vld [vmem:[%s2754_s1 + $0x18] sm:$0xff]   ;;  %v1817_v7 = vld [vmem:[%s2754_s1 + $0x10] sm:$0xff]  }
   0x3   :  { %634 = vmatprep.subr.bf16.mxu0 %v1904_v0  ;;  %1779 = vmatprep.subr.bf16.mxu1 %v1904_v0  ;;  %v1830_v6 = vld [vmem:[%s2755_s0 + $0x4] ss:$12 sps:$4 sm:$0xff]   ;;  %v1833_v8 = vld [vmem:[%s2755_s0 + $0x154] ss:$12 sps:$4 sm:$0xff]   ;;  %v1818_v9 = vld [vmem:[%s2754_s1 + $0x8] sm:$0xff]  }
   0x4   :  { %664 = vmatprep.mubr.bf16.mxu0 %v1830_v6  ;;  %776 = vmatprep.mubr.bf16.mxu1 %v1833_v8  ;;  %v1819_v10 = vld [vmem:[%s2754_s1] sm:$0xff]   ;;  %v1820_v11 = vld [vmem:[%s2754_s1 + $0x78] sm:$0xff]   ;;  %v1821_v12 = vld [vmem:[%s2754_s1 + $0x70] sm:$0xff]  }
   0x5   :  { %v1822_v13 = vld [vmem:[%s2754_s1 + $0x68] sm:$0xff]   ;;  %v1823_v14 = vld [vmem:[%s2754_s1 + $0x60] sm:$0xff]   ;;  %v1824_v15 = vld [vmem:[%s2754_s1 + $0x58] sm:$0xff]  }
   0x6   :  { %635 = vmatpush1.bf16.msra.mxu0 %v1813_v2  ;;  %1795 = vmatpush1.bf16.msra.mxu1 %v1813_v2  ;;  %v1825_v16 = vld [vmem:[%s2754_s1 + $0x50] sm:$0xff]   ;;  %v1826_v17 = vld [vmem:[%s2754_s1 + $0x48] sm:$0xff]   ;;  %v1827_v18 = vld [vmem:[%s2754_s1 + $0x40] sm:$0xff]  }
   0x7   :  { %636 = vmatprep.subr.bf16.mxu0 %v1904_v0  ;;  %1780 = vmatprep.subr.bf16.mxu1 %v1904_v0  ;;  %v1846_v19 = vld [vmem:[%s2754_s1 + $0x88] sm:$0xff]   ;;  %v1831_v21 = vld [vmem:[%s2755_s0 + $0x150] ss:$12 sps:$4 sm:$0xff]   ;;  %v1853_v24 = vld [vmem:[%s2754_s1 + $0x80] sm:$0xff]  }
   0x8   :  { %v1828_v20 = vld [vmem:[%s2755_s0] ss:$12 sps:$4 sm:$0xff]   ;;  %v1834_v22 = vld [vmem:[%s2755_s0 + $0x1c] ss:$12 sps:$4 sm:$0xff]   ;;  %v1838_v25 = vld [vmem:[%s2755_s0 + $0x18] ss:$12 sps:$4 sm:$0xff]  }
   0x9   :  { %v1836_v23 = vld [vmem:[%s2755_s0 + $0x16c] ss:$12 sps:$4 sm:$0xff]   ;;  %v1839_v26 = vld [vmem:[%s2755_s0 + $0x168] ss:$12 sps:$4 sm:$0xff]   ;;  %v1842_v28 = vld [vmem:[%s2755_s0 + $0x184] ss:$12 sps:$4 sm:$0xff]  }
   0xa   :  { %637 = vmatpush1.bf16.msra.mxu0 %v1814_v3  ;;  %1796 = vmatpush1.bf16.msra.mxu1 %v1814_v3  ;;  %v1840_v27 = vld [vmem:[%s2755_s0 + $0x34] ss:$12 sps:$4 sm:$0xff]   ;;  %v1844_v29 = vld [vmem:[%s2755_s0 + $0x30] ss:$12 sps:$4 sm:$0xff]   ;;  %v1847_v31 = vld [vmem:[%s2755_s0 + $0x4c] ss:$12 sps:$4 sm:$0xff]  }
   0xb   :  { %638 = vmatprep.subr.bf16.mxu0 %v1904_v0  ;;  %1781 = vmatprep.subr.bf16.mxu1 %v1904_v0  ;;  %v1845_v30 = vld [vmem:[%s2755_s0 + $0x180] ss:$12 sps:$4 sm:$0xff]   ;;  %v1849_v32 = vld [vmem:[%s2755_s0 + $0x19c] ss:$12 sps:$4 sm:$0xff]   ;;  %v1852_v34 = vld [vmem:[%s2755_s0 + $0x198] ss:$12 sps:$4 sm:$0xff]  }
   0xc   :  { %v1851_v33 = vld [vmem:[%s2755_s0 + $0x48] ss:$12 sps:$4 sm:$0xff]   ;;  %v1854_v35 = vld [vmem:[%s2755_s0 + $0x64] ss:$12 sps:$4 sm:$0xff]   ;;  %v1857_v37 = vld [vmem:[%s2755_s0 + $0x60] ss:$12 sps:$4 sm:$0xff]  }
   0xd   :  { %v1856_v36 = vld [vmem:[%s2755_s0 + $0x8] ss:$12 sps:$4 sm:$0xff]   ;;  %v1858_v38 = vld [vmem:[%s2755_s0 + $0x20] ss:$12 sps:$4 sm:$0xff]   ;;  %v1861_v40 = vld [vmem:[%s2755_s0 + $0x38] ss:$12 sps:$4 sm:$0xff]  }
   0xe   :  { %639 = vmatpush1.bf16.msra.mxu0 %v1815_v4  ;;  %1797 = vmatpush1.bf16.msra.mxu1 %v1815_v4  ;;  %v1859_v39 = vld [vmem:[%s2755_s0 + $0x7c] ss:$12 sps:$4 sm:$0xff]   ;;  %v1862_v41 = vld [vmem:[%s2755_s0 + $0x78] ss:$12 sps:$4 sm:$0xff]   ;;  %v1864_v43 = vld [vmem:[%s2755_s0 + $0x94] ss:$12 sps:$4 sm:$0xff]  }
   0xf   :  { %640 = vmatprep.subr.bf16.mxu0 %v1904_v0  ;;  %1782 = vmatprep.subr.bf16.mxu1 %v1904_v0  ;;  %v1863_v42 = vld [vmem:[%s2755_s0 + $0x50] ss:$12 sps:$4 sm:$0xff]   ;;  %v1866_v44 = vld [vmem:[%s2755_s0 + $0x68] ss:$12 sps:$4 sm:$0xff]   ;;  %v1868_v46 = vld [vmem:[%s2755_s0 + $0x80] ss:$12 sps:$4 sm:$0xff]  }
  0x10   :  { %v1867_v45 = vld [vmem:[%s2755_s0 + $0x90] ss:$12 sps:$4 sm:$0xff]   ;;  %v1869_v47 = vld [vmem:[%s2755_s0 + $0xac] ss:$12 sps:$4 sm:$0xff]   ;;  %v1872_v49 = vld [vmem:[%s2755_s0 + $0xa8] ss:$12 sps:$4 sm:$0xff]  }
  0x11   :  { %v1871_v48 = vld [vmem:[%s2755_s0 + $0x98] ss:$12 sps:$4 sm:$0xff]   ;;  %v1873_v50 = vld [vmem:[%s2755_s0 + $0xb0] ss:$12 sps:$4 sm:$0xff]   ;;  %v1876_v52 = vld [vmem:[%s2755_s0 + $0xc8] ss:$12 sps:$4 sm:$0xff]  }
  0x12   :  { %641 = vmatpush1.bf16.msra.mxu0 %v1816_v5  ;;  %1798 = vmatpush1.bf16.msra.mxu1 %v1816_v5  ;;  %v1874_v51 = vld [vmem:[%s2755_s0 + $0xc4] ss:$12 sps:$4 sm:$0xff]   ;;  %v1877_v53 = vld [vmem:[%s2755_s0 + $0xc0] ss:$12 sps:$4 sm:$0xff]   ;;  %v1879_v55 = vld [vmem:[%s2755_s0 + $0xdc] ss:$12 sps:$4 sm:$0xff]  }
  0x13   :  { %642 = vmatprep.subr.bf16.mxu0 %v1904_v0  ;;  %1783 = vmatprep.subr.bf16.mxu1 %v1904_v0  ;;  %v1878_v54 = vld [vmem:[%s2755_s0 + $0xe0] ss:$12 sps:$4 sm:$0xff]   ;;  %v1881_v56 = vld [vmem:[%s2755_s0 + $0xf8] ss:$12 sps:$4 sm:$0xff]   ;;  %v1883_v58 = vld [vmem:[%s2755_s0 + $0x110] ss:$12 sps:$4 sm:$0xff]  }
  0x14   :  { %v1882_v57 = vld [vmem:[%s2755_s0 + $0xd8] ss:$12 sps:$4 sm:$0xff]   ;;  %v1884_v59 = vld [vmem:[%s2755_s0 + $0xf4] ss:$12 sps:$4 sm:$0xff]   ;;  %v1887_v61 = vld [vmem:[%s2755_s0 + $0xf0] ss:$12 sps:$4 sm:$0xff]  }
  0x15   :  { %v1886_v60 = vld [vmem:[%s2755_s0 + $0x128] ss:$12 sps:$4 sm:$0xff]   ;;  %v1888_v62 = vld [vmem:[%s2755_s0 + $0x140] ss:$12 sps:$4 sm:$0xff]   ;;  %v1893_v2 = vld [vmem:[%s2755_s0 + $0x170] ss:$12 sps:$4 sm:$0xff]  }
  0x16   :  { %643 = vmatpush1.bf16.msra.mxu0 %v1817_v7  ;;  %1799 = vmatpush1.bf16.msra.mxu1 %v1817_v7  ;;  %v1889_v63 = vld [vmem:[%s2755_s0 + $0x10c] ss:$12 sps:$4 sm:$0xff]   ;;  %v1892_v1 = vld [vmem:[%s2755_s0 + $0x108] ss:$12 sps:$4 sm:$0xff]   ;;  %v1894_v3 = vld [vmem:[%s2755_s0 + $0x124] ss:$12 sps:$4 sm:$0xff]  }
  0x17   :  { %644 = vmatprep.subr.bf16.mxu0 %v1904_v0  ;;  %1784 = vmatprep.subr.bf16.mxu1 %v1904_v0  ;;  %v1896_v4 = vld [vmem:[%s2755_s0 + $0x188] ss:$12 sps:$4 sm:$0xff]   ;;  %v1897_v5 = vld [vmem:[%s2755_s0 + $0x120] ss:$12 sps:$4 sm:$0xff]   ;;  %v1901_v8 = vld [vmem:[%s2755_s0 + $0x138] ss:$12 sps:$4 sm:$0xff]  }
  0x18   :  { %v1898_v6 = vld [vmem:[%s2755_s0 + $0x1a0] ss:$12 sps:$4 sm:$0xff]   ;;  %v1899_v7 = vld [vmem:[%s2755_s0 + $0x13c] ss:$12 sps:$4 sm:$0xff]  }
  0x1a   :  { %645 = vmatpush1.bf16.msra.mxu0 %v1818_v9  ;;  %1800 = vmatpush1.bf16.msra.mxu1 %v1818_v9 }
  0x1b   :  { %646 = vmatprep.subr.bf16.mxu0 %v1904_v0  ;;  %1785 = vmatprep.subr.bf16.mxu1 %v1904_v0 }
  0x1e   :  { %647 = vmatpush1.bf16.msra.mxu0 %v1819_v10  ;;  %1801 = vmatpush1.bf16.msra.mxu1 %v1819_v10 }
  0x1f   :  { %648 = vmatprep.subr.bf16.mxu0 %v1904_v0  ;;  %1786 = vmatprep.subr.bf16.mxu1 %v1904_v0 }
  0x22   :  { %649 = vmatpush2.bf16.msra.mxu0 %v1820_v11  ;;  %1802 = vmatpush2.bf16.msra.mxu1 %v1820_v11 }
  0x23   :  { %650 = vmatprep.subr.bf16.mxu0 %v1904_v0  ;;  %1787 = vmatprep.subr.bf16.mxu1 %v1904_v0 }
  0x26   :  { %651 = vmatpush2.bf16.msra.mxu0 %v1821_v12  ;;  %1803 = vmatpush2.bf16.msra.mxu1 %v1821_v12 }
  0x27   :  { %652 = vmatprep.subr.bf16.mxu0 %v1904_v0  ;;  %1788 = vmatprep.subr.bf16.mxu1 %v1904_v0 }
  0x2a   :  { %653 = vmatpush2.bf16.msra.mxu0 %v1822_v13  ;;  %1804 = vmatpush2.bf16.msra.mxu1 %v1822_v13 }
  0x2b   :  { %654 = vmatprep.subr.bf16.mxu0 %v1904_v0  ;;  %1789 = vmatprep.subr.bf16.mxu1 %v1904_v0 }
  0x2e   :  { %655 = vmatpush2.bf16.msra.mxu0 %v1823_v14  ;;  %1805 = vmatpush2.bf16.msra.mxu1 %v1823_v14 }
  0x2f   :  { %656 = vmatprep.subr.bf16.mxu0 %v1904_v0  ;;  %1790 = vmatprep.subr.bf16.mxu1 %v1904_v0 }
  0x32   :  { %657 = vmatpush2.bf16.msra.mxu0 %v1824_v15  ;;  %1806 = vmatpush2.bf16.msra.mxu1 %v1824_v15 }
  0x33   :  { %658 = vmatprep.subr.bf16.mxu0 %v1904_v0  ;;  %1791 = vmatprep.subr.bf16.mxu1 %v1904_v0 }
  0x36   :  { %659 = vmatpush2.bf16.msra.mxu0 %v1825_v16  ;;  %1807 = vmatpush2.bf16.msra.mxu1 %v1825_v16 }
  0x37   :  { %660 = vmatprep.subr.bf16.mxu0 %v1904_v0  ;;  %1792 = vmatprep.subr.bf16.mxu1 %v1904_v0 }
  0x3a   :  { %661 = vmatpush2.bf16.msra.mxu0 %v1826_v17  ;;  %1808 = vmatpush2.bf16.msra.mxu1 %v1826_v17 }
  0x3b   :  { %662 = vmatprep.subr.bf16.mxu0 %v1904_v0  ;;  %1793 = vmatprep.subr.bf16.mxu1 %v1904_v0  ;;  %v1891_v0 = vld [vmem:[%s2755_s0 + $0x158] ss:$12 sps:$4 sm:$0xff]  }
  0x3e   :  { %663 = vmatpush2.bf16.msra.mxu0 %v1827_v18  ;;  %1809 = vmatpush2.bf16.msra.mxu1 %v1827_v18 }
  0x3f   :  { %1738 = vmatprep.subr.bf16.mxu1 %v1846_v19 }
  0x41   :  { %665 = vmatmul.mubr.bf16.vlgmr.msra.gmra.mxu0 %v1828_v20  ;;  %777 = vmatmul.mubr.bf16.vlgmr.msra.gmra.mxu1 %v1831_v21 }
  0x42   :  { %672 = vmatprep.mubr.bf16.mxu0 %v1834_v22  ;;  %784 = vmatprep.mubr.bf16.mxu1 %v1836_v23 }
  0x43   :  { %1739 = vmatpush3.bf16.msra.mxu1 %v1846_v19 }
  0x44   :  { %1740 = vmatprep.subr.bf16.mxu1 %v1853_v24 }
  0x47   :  { %1741 = vmatpush3.bf16.msra.mxu1 %v1853_v24 }
  0x49   :  { %673 = vmatmul.mubr.bf16.gmra.mxu0 %v1838_v25  ;;  %785 = vmatmul.mubr.bf16.gmra.mxu1 %v1839_v26 }
  0x4a   :  { %680 = vmatprep.mubr.bf16.mxu0 %v1840_v27  ;;  %792 = vmatprep.mubr.bf16.mxu1 %v1842_v28 }
  0x51   :  { %681 = vmatmul.mubr.bf16.gmra.mxu0 %v1844_v29  ;;  %793 = vmatmul.mubr.bf16.gmra.mxu1 %v1845_v30 }
  0x52   :  { %688 = vmatprep.mubr.bf16.mxu0 %v1847_v31  ;;  %800 = vmatprep.mubr.bf16.mxu1 %v1849_v32 }
  0x59   :  { %689 = vmatmul.mubr.bf16.gmra.mxu0 %v1851_v33  ;;  %801 = vmatmul.mubr.bf16.gmra.mxu1 %v1852_v34 }
  0x5a   :  { %696 = vmatprep.mubr.bf16.mxu0 %v1854_v35  ;;  %1742 = vmatprep.mubr.msk.bf16.mxu1 %vm577_vm0, %v1856_v36 }
  0x61   :  { %697 = vmatmul.mubr.bf16.gmra.mxu0 %v1857_v37  ;;  %1743 = vmatmul.mubr.msk.bf16.vlgmr.msra.gmra.mxu1 %vm577_vm0, %v1858_v38 }
  0x62   :  { %704 = vmatprep.mubr.bf16.mxu0 %v1859_v39  ;;  %1746 = vmatprep.mubr.msk.bf16.mxu1 %vm577_vm0, %v1861_v40 }
  0x69   :  { %705 = vmatmul.mubr.bf16.gmra.mxu0 %v1862_v41  ;;  %1747 = vmatmul.mubr.msk.bf16.gmra.mxu1 %vm577_vm0, %v1863_v42 }
  0x6a   :  { %712 = vmatprep.mubr.bf16.mxu0 %v1864_v43  ;;  %1750 = vmatprep.mubr.msk.bf16.mxu1 %vm577_vm0, %v1866_v44 }
  0x71   :  { %713 = vmatmul.mubr.bf16.gmra.mxu0 %v1867_v45  ;;  %1751 = vmatmul.mubr.msk.bf16.gmra.mxu1 %vm577_vm0, %v1868_v46 }
  0x72   :  { %720 = vmatprep.mubr.bf16.mxu0 %v1869_v47  ;;  %1754 = vmatprep.mubr.msk.bf16.mxu1 %vm577_vm0, %v1871_v48 }
  0x79   :  { %721 = vmatmul.mubr.bf16.gmra.mxu0 %v1872_v49  ;;  %1755 = vmatmul.mubr.msk.bf16.gmra.mxu1 %vm577_vm0, %v1873_v50 }
  0x7a   :  { %728 = vmatprep.mubr.bf16.mxu0 %v1874_v51  ;;  %1758 = vmatprep.mubr.msk.bf16.mxu1 %vm577_vm0, %v1876_v52 }
  0x81   :  { %729 = vmatmul.mubr.bf16.gmra.mxu0 %v1877_v53  ;;  %1759 = vmatmul.mubr.msk.bf16.gmra.mxu1 %vm577_vm0, %v1878_v54 }
  0x82   :  { %736 = vmatprep.mubr.bf16.mxu0 %v1879_v55  ;;  %1762 = vmatprep.mubr.msk.bf16.mxu1 %vm577_vm0, %v1881_v56  ;;  %v2210_v55 = vld [vmem:[%s2756_s2] ss:$0 sm:$0xff] }
  0x89   :  { %737 = vmatmul.mubr.bf16.gmra.mxu0 %v1882_v57  ;;  %1763 = vmatmul.mubr.msk.bf16.gmra.mxu1 %vm577_vm0, %v1883_v58 }
  0x8a   :  { %744 = vmatprep.mubr.bf16.mxu0 %v1884_v59  ;;  %1766 = vmatprep.mubr.msk.bf16.mxu1 %vm577_vm0, %v1886_v60 }
  0x91   :  { %745 = vmatmul.mubr.bf16.gmra.mxu0 %v1887_v61  ;;  %1767 = vmatmul.mubr.msk.bf16.gmra.mxu1 %vm577_vm0, %v1888_v62 }
  0x92   :  { %752 = vmatprep.mubr.bf16.mxu0 %v1889_v63  ;;  %1770 = vmatprep.mubr.msk.bf16.mxu1 %vm577_vm0, %v1891_v0 }
  0x99   :  { %753 = vmatmul.mubr.bf16.gmra.mxu0 %v1892_v1  ;;  %1771 = vmatmul.mubr.msk.bf16.gmra.mxu1 %vm577_vm0, %v1893_v2 }
  0x9a   :  { %760 = vmatprep.mubr.bf16.mxu0 %v1894_v3  ;;  %1774 = vmatprep.mubr.msk.bf16.mxu1 %vm577_vm0, %v1896_v4 }
  0xa1   :  { %761 = vmatmul.mubr.bf16.gmra.mxu0 %v1897_v5  ;;  %1775 = vmatmul.mubr.msk.bf16.gmra.mxu1 %vm577_vm0, %v1898_v6 }
  0xa2   :  { %768 = vmatprep.mubr.bf16.mxu0 %v1899_v7 }
  0xa9   :  { %769 = vmatmul.mubr.bf16.gmra.mxu0 %v1901_v8 }
 0x101   :  { %v666_v9 = vpop.f32.mrf.mxu0  ;;  %v2191_v10 = vpop.f32.mrf.mxu1 }
 0x103   :  { %v668_v11 = vpop.f32.mrf.mxu0  ;;  %v780_v12 = vpop.f32.mrf.mxu1 }
 0x105   :  { %v669_v13 = vpop.f32.mrf.mxu0  ;;  %v2193_v14 = vpop.f32.mrf.mxu1 }
 0x107   :  { %v671_v15 = vpop.f32.mrf.mxu0  ;;  %v783_v16 = vpop.f32.mrf.mxu1 }
 0x109   :  { %v674_v17 = vpop.f32.mrf.mxu0  ;;  %v2195_v18 = vpop.f32.mrf.mxu1 }
 0x10b   :  { %v676_v19 = vpop.f32.mrf.mxu0  ;;  %v788_v20 = vpop.f32.mrf.mxu1 }
 0x10d   :  { %v677_v21 = vpop.f32.mrf.mxu0  ;;  %v2197_v22 = vpop.f32.mrf.mxu1 }
 0x10f   :  { %v679_v23 = vpop.f32.mrf.mxu0  ;;  %v791_v24 = vpop.f32.mrf.mxu1 }
 0x111   :  { %v682_v25 = vpop.f32.mrf.mxu0  ;;  %v2199_v26 = vpop.f32.mrf.mxu1 }
 0x113   :  { %v684_v27 = vpop.f32.mrf.mxu0  ;;  %v796_v28 = vpop.f32.mrf.mxu1 }
 0x115   :  { %v685_v29 = vpop.f32.mrf.mxu0  ;;  %v2201_v30 = vpop.f32.mrf.mxu1 }
 0x117   :  { %v687_v31 = vpop.f32.mrf.mxu0  ;;  %v799_v32 = vpop.f32.mrf.mxu1 }
 0x119   :  { %v690_v33 = vpop.f32.mrf.mxu0  ;;  %v2203_v34 = vpop.f32.mrf.mxu1 }
 0x11b   :  { %v692_v35 = vpop.f32.mrf.mxu0  ;;  %v804_v36 = vpop.f32.mrf.mxu1 }
 0x11d   :  { %v693_v37 = vpop.f32.mrf.mxu0  ;;  %v2205_v38 = vpop.f32.mrf.mxu1 }
 0x11f   :  { %v695_v39 = vpop.f32.mrf.mxu0  ;;  %v807_v40 = vpop.f32.mrf.mxu1 }
 0x121   :  { %v698_v41 = vpop.f32.mrf.mxu0  ;;  %v1744_v42 = vpop.f32.mrf.mxu1 }
 0x122   :  { %v852_v48 = vadd.f32 %v1744_v42, %v674_v17 }
 0x123   :  { %v700_v43 = vpop.f32.mrf.mxu0  ;;  %v843_v44 = vpop.f32.mrf.mxu1 }
 0x124   :  { %v844_v45 = vadd.f32 %v843_v44, %v666_v9  ;;  %v2219_v63 = vadd.f32 %v2210_v55, %v852_v48 }
 0x125   :  { %v701_v46 = vpop.f32.mrf.mxu0  ;;  %v1745_v47 = vpop.f32.mrf.mxu1 }
 0x126   :  { %v855_v51 = vadd.f32 %v1745_v47, %v677_v21  ;;  %v2213_v58 = vadd.f32 %v2210_v55, %v844_v45 }
 0x127   :  { %v703_v49 = vpop.f32.mrf.mxu0  ;;  %v846_v50 = vpop.f32.mrf.mxu1 }
 0x128   :  { %v847_v52 = vadd.f32 %v846_v50, %v669_v13  ;;  %v2224_v4 = vadd.f32 %v2210_v55, %v855_v51 }
 0x129   :  { %v706_v53 = vpop.f32.mrf.mxu0  ;;  %v1748_v54 = vpop.f32.mrf.mxu1 }
 0x12a   :  { %v2216_v59 = vadd.f32 %v2210_v55, %v847_v52  ;;  %v868_v1 = vadd.f32 %v1748_v54, %v690_v33 }
 0x12b   :  { %v708_v56 = vpop.f32.mrf.mxu0  ;;  %v859_v57 = vpop.f32.mrf.mxu1 }
 0x12c   :  { %v860_v60 = vadd.f32 %v859_v57, %v682_v25  ;;  %v1321_v0 = vadd.f32 %v2216_v59, %v2213_v58  ;;  %v2236_v23 = vadd.f32 %v2210_v55, %v868_v1 }
 0x12d   :  { %v709_v61 = vpop.f32.mrf.mxu0  ;;  %v1749_v62 = vpop.f32.mrf.mxu1 }
 0x12e   :  { %v1322_v5 = vadd.f32 %v1321_v0, %v2219_v63  ;;  %v871_v6 = vadd.f32 %v1749_v62, %v693_v37  ;;  %v2228_v11 = vadd.f32 %v2210_v55, %v860_v60 }
 0x12f   :  { %v711_v2 = vpop.f32.mrf.mxu0  ;;  %v862_v3 = vpop.f32.mrf.mxu1 }
 0x130   :  { %v863_v7 = vadd.f32 %v862_v3, %v685_v29  ;;  %v1323_v12 = vadd.f32 %v1322_v5, %v2224_v4  ;;  %v2240_v28 = vadd.f32 %v2210_v55, %v871_v6 }
 0x131   :  { %v714_v8 = vpop.f32.mrf.mxu0  ;;  %v1752_v9 = vpop.f32.mrf.mxu1 }
 0x132   :  { %v1324_v16 = vadd.f32 %v1323_v12, %v2228_v11  ;;  %v2233_v17 = vadd.f32 %v2210_v55, %v863_v7  ;;  %v884_v31 = vadd.f32 %v1752_v9, %v706_v53 }
 0x133   :  { %v716_v13 = vpop.f32.mrf.mxu0  ;;  %v875_v15 = vpop.f32.mrf.mxu1 }
 0x134   :  { %v876_v19 = vadd.f32 %v875_v15, %v698_v41  ;;  %v1325_v24 = vadd.f32 %v1324_v16, %v2233_v17  ;;  %v2253_v49 = vadd.f32 %v2210_v55, %v884_v31 }
 0x135   :  { %v717_v20 = vpop.f32.mrf.mxu0  ;;  %v1753_v21 = vpop.f32.mrf.mxu1 }
 0x136   :  { %v1326_v29 = vadd.f32 %v1325_v24, %v2236_v23  ;;  %v2244_v36 = vadd.f32 %v2210_v55, %v876_v19  ;;  %v887_v42 = vadd.f32 %v1753_v21, %v709_v61 }
 0x137   :  { %v719_v25 = vpop.f32.mrf.mxu0  ;;  %v878_v27 = vpop.f32.mrf.mxu1 }
 0x138   :  { %v879_v32 = vadd.f32 %v878_v27, %v701_v46  ;;  %v1327_v37 = vadd.f32 %v1326_v29, %v2240_v28  ;;  %v2257_v60 = vadd.f32 %v2210_v55, %v887_v42 }
 0x139   :  { %v722_v33 = vpop.f32.mrf.mxu0  ;;  %v1756_v35 = vpop.f32.mrf.mxu1 }
 0x13a   :  { %v1328_v41 = vadd.f32 %v1327_v37, %v2244_v36  ;;  %v2249_v43 = vadd.f32 %v2210_v55, %v879_v32  ;;  %v900_v3 = vadd.f32 %v1756_v35, %v722_v33 }
 0x13b   :  { %v724_v39 = vpop.f32.mrf.mxu0  ;;  %v891_v40 = vpop.f32.mrf.mxu1 }
 0x13c   :  { %v1329_v47 = vadd.f32 %v1328_v41, %v2249_v43  ;;  %v892_v50 = vadd.f32 %v891_v40, %v714_v8  ;;  %v2269_v25 = vadd.f32 %v2210_v55, %v900_v3 }
 0x13d   :  { %v725_v44 = vpop.f32.mrf.mxu0  ;;  %v1757_v45 = vpop.f32.mrf.mxu1 }
 0x13e   :  { %v1330_v53 = vadd.f32 %v1329_v47, %v2253_v49  ;;  %v2261_v5 = vadd.f32 %v2210_v55, %v892_v50  ;;  %v903_v15 = vadd.f32 %v1757_v45, %v725_v44 }
 0x13f   :  { %v727_v46 = vpop.f32.mrf.mxu0  ;;  %v894_v48 = vpop.f32.mrf.mxu1 }
 0x140   :  { %v895_v54 = vadd.f32 %v894_v48, %v717_v20  ;;  %v1331_v0 = vadd.f32 %v1330_v53, %v2257_v60  ;;  %v2273_v39 = vadd.f32 %v2210_v55, %v903_v15 }
 0x141   :  { %v730_v51 = vpop.f32.mrf.mxu0  ;;  %v1760_v52 = vpop.f32.mrf.mxu1 }
 0x142   :  { %v1332_v8 = vadd.f32 %v1331_v0, %v2261_v5  ;;  %v2265_v9 = vadd.f32 %v2210_v55, %v895_v54 }
 0x143   :  { %v732_v56 = vpop.f32.mrf.mxu0  ;;  %v907_v57 = vpop.f32.mrf.mxu1 }
 0x144   :  { %v1333_v20 = vadd.f32 %v1332_v8, %v2265_v9  ;;  %v908_v27 = vadd.f32 %v907_v57, %v730_v51 }
 0x145   :  { %v733_v61 = vpop.f32.mrf.mxu0  ;;  %v1761_v62 = vpop.f32.mrf.mxu1 }
 0x146   :  { %v1334_v33 = vadd.f32 %v1333_v20, %v2269_v25  ;;  %v2277_v46 = vadd.f32 %v2210_v55, %v908_v27 }
 0x147   :  { %v735_v1 = vpop.f32.mrf.mxu0  ;;  %v910_v2 = vpop.f32.mrf.mxu1 }
 0x148   :  { %v911_v32 = vadd.f32 %v910_v2, %v733_v61  ;;  %v1335_v44 = vadd.f32 %v1334_v33, %v2273_v39 }
 0x149   :  { %v738_v6 = vpop.f32.mrf.mxu0  ;;  %v1764_v7 = vpop.f32.mrf.mxu1 }
 0x14a   :  { %v916_v42 = vadd.f32 %v1760_v52, %v738_v6  ;;  %v2280_v54 = vadd.f32 %v2210_v55, %v911_v32  ;;  %v1336_v56 = vadd.f32 %v1335_v44, %v2277_v46 }
 0x14b   :  { %v740_v12 = vpop.f32.mrf.mxu0  ;;  %v923_v13 = vpop.f32.mrf.mxu1 }
 0x14c   :  { %v2284_v2 = vadd.f32 %v2210_v55, %v916_v42  ;;  %v1337_v3 = vadd.f32 %v1336_v56, %v2280_v54 }
 0x14d   :  { %v741_v16 = vpop.f32.mrf.mxu0  ;;  %v1765_v19 = vpop.f32.mrf.mxu1 }
 0x14e   :  { %v919_v48 = vadd.f32 %v1761_v62, %v741_v16  ;;  %v1338_v20 = vadd.f32 %v1337_v3, %v2284_v2 }
 0x14f   :  { %v743_v21 = vpop.f32.mrf.mxu0  ;;  %v926_v24 = vpop.f32.mrf.mxu1 }
 0x150   :  { %v2288_v12 = vadd.f32 %v2210_v55, %v919_v48 }
 0x151   :  { %v746_v29 = vpop.f32.mrf.mxu0  ;;  %v1768_v31 = vpop.f32.mrf.mxu1 }
 0x152   :  { %v924_v53 = vadd.f32 %v923_v13, %v746_v29  ;;  %v1339_v27 = vadd.f32 %v1338_v20, %v2288_v12 }
 0x153   :  { %v748_v35 = vpop.f32.mrf.mxu0  ;;  %v939_v37 = vpop.f32.mrf.mxu1 }
 0x154   :  { %v2291_v16 = vadd.f32 %v2210_v55, %v924_v53 }
 0x155   :  { %v749_v40 = vpop.f32.mrf.mxu0  ;;  %v1769_v41 = vpop.f32.mrf.mxu1 }
 0x156   :  { %v927_v0 = vadd.f32 %v926_v24, %v749_v40  ;;  %v1340_v33 = vadd.f32 %v1339_v27, %v2291_v16 }
 0x157   :  { %v751_v45 = vpop.f32.mrf.mxu0  ;;  %v942_v47 = vpop.f32.mrf.mxu1 }
 0x158   :  { %v2295_v24 = vadd.f32 %v2210_v55, %v927_v0 }
 0x159   :  { %v754_v50 = vpop.f32.mrf.mxu0  ;;  %v1772_v51 = vpop.f32.mrf.mxu1 }
 0x15a   :  { %v932_v1 = vadd.f32 %v1764_v7, %v754_v50  ;;  %v1341_v42 = vadd.f32 %v1340_v33, %v2295_v24 }
 0x15b   :  { %v756_v57 = vpop.f32.mrf.mxu0  ;;  %v955_v61 = vpop.f32.mrf.mxu1 }
 0x15c   :  { %v956_v56 = vadd.f32 %v955_v61, %v2191_v10 }
 0x15d   :  { %v757_v52 = vpop.f32.mrf.mxu0  ;;  %v1773_v6 = vpop.f32.mrf.mxu1 }
 0x15e   :  { %v935_v8 = vadd.f32 %v1765_v19, %v757_v52  ;;  %v2299_v19 = vadd.f32 %v2210_v55, %v932_v1  ;;  %v967_v61 = vadd.f32 %v1773_v6, %v2197_v22 }
 0x15f   :  { %v759_v62 = vpop.f32.mrf.mxu0  ;;  %v958_v21 = vpop.f32.mrf.mxu1 }
 0x160   :  { %v2303_v40 = vadd.f32 %v2210_v55, %v935_v8  ;;  %v1342_v50 = vadd.f32 %v1341_v42, %v2299_v19  ;;  %v959_v1 = vadd.f32 %v958_v21, %v2193_v14  ;;  %v2329_v21 = vadd.f32 %v2210_v55, %v956_v56 }
 0x161   :  { %v762_v13 = vpop.f32.mrf.mxu0  ;;  %v1776_v35 = vpop.f32.mrf.mxu1  ;;  %v2344_v33 = vadd.f32 %v2210_v55, %v967_v61 }
 0x162   :  { %v940_v15 = vadd.f32 %v939_v37, %v762_v13  ;;  %v1343_v0 = vadd.f32 %v1342_v50, %v2303_v40 }
 0x163   :  { %v764_v7 = vpop.f32.mrf.mxu0 }
 0x164   :  { %v2307_v48 = vadd.f32 %v2210_v55, %v940_v15  ;;  %v964_v15 = vadd.f32 %v1772_v51, %v2195_v18  ;;  %v2334_v18 = vadd.f32 %v2210_v55, %v959_v1  ;;  %v980_v51 = vadd.f32 %v1776_v35, %v2203_v34 }
 0x165   :  { %v765_v29 = vpop.f32.mrf.mxu0 }
 0x166   :  { %v943_v32 = vadd.f32 %v942_v47, %v765_v29  ;;  %v971_v47 = vpop.f32.mrf.mxu1  ;;  %v1344_v62 = vadd.f32 %v1343_v0, %v2307_v48  ;;  %v2339_v6 = vadd.f32 %v2210_v55, %v964_v15  ;;  %v1138_v35 = vadd.f32 %v2210_v55, %v980_v51 }
 0x167   :  { %v767_v37 = vpop.f32.mrf.mxu0 }
 0x168   :  { %v2312_v57 = vadd.f32 %v2210_v55, %v943_v32  ;;  %v1777_v8 = vpop.f32.mrf.mxu1 }
 0x169   :  { %v770_v44 = vpop.f32.mrf.mxu0 }
 0x16a   :  { %v948_v45 = vadd.f32 %v1768_v31, %v770_v44  ;;  %v1345_v10 = vadd.f32 %v1344_v62, %v2312_v57  ;;  %v974_v14 = vpop.f32.mrf.mxu1 }
 0x16b   :  { %v772_v53 = vpop.f32.mrf.mxu0  ;;  %v975_v29 = vadd.f32 %v974_v14, %v2201_v30 }
 0x16c   :  { %v2317_v31 = vadd.f32 %v2210_v55, %v948_v45 }
 0x16d   :  { %v773_v52 = vpop.f32.mrf.mxu0  ;;  %v1137_v44 = vadd.f32 %v2210_v55, %v975_v29 }
 0x16e   :  { %v951_v3 = vadd.f32 %v1769_v41, %v773_v52  ;;  %v1346_v7 = vadd.f32 %v1345_v10, %v2317_v31  ;;  %v972_v41 = vadd.f32 %v971_v47, %v2199_v26  ;;  %v983_v26 = vadd.f32 %v1777_v8, %v2205_v38 }
 0x16f   :  { %v775_v13 = vpop.f32.mrf.mxu0 }
 0x170   :  { %v2324_v20 = vadd.f32 %v2210_v55, %v951_v3  ;;  %v2348_v30 = vadd.f32 %v2210_v55, %v972_v41  ;;  %v1139_v50 = vadd.f32 %v2210_v55, %v983_v26 }
 0x172   :  { %v1347_v27 = vadd.f32 %v1346_v7, %v2324_v20 }
 0x174   :  { %v1348_v22 = vadd.f32 %v1347_v27, %v2329_v21 }
 0x176   :  { %v1349_v32 = vadd.f32 %v1348_v22, %v2334_v18 }
 0x178   :  { %v1350_v37 = vadd.f32 %v1349_v32, %v2339_v6 }
 0x17a   :  { %v1351_v42 = vadd.f32 %v1350_v37, %v2344_v33 }
 0x17c   :  { %v1352_v34 = vadd.f32 %v1351_v42, %v2348_v30 }
 0x17e   :  { %v1353_v45 = vadd.f32 %v1352_v34, %v1137_v44 }
 0x180   :  { %v1354_v38 = vadd.f32 %v1353_v45, %v1138_v35 }
 0x182   :  { %v1355_v47 = vadd.f32 %v1354_v38, %v1139_v50 }
 0x184   :  { %v1356_v53 = vrot.slane %v1355_v47, 4 }
 0x186   :  { %v1357_v56 = vadd.f32 %v1356_v53, %v1355_v47 }
 0x188   :  { %v1358_v0 = vrot.slane %v1357_v56, 2 }
 0x18a   :  { %v1359_v52 = vadd.f32 %v1358_v0, %v1357_v56 }
 0x18c   :  { %v1360_v1 = vrot.slane %v1359_v52, 1 }
 0x18e   :  { %v1361_v3 = vadd.f32 %v1360_v1, %v1359_v52 }
 0x190   :  { %v2355_v62 = vmul.f32 0.0034722222, %v1361_v3 }
 0x192   :  { %v2358_v8 = vsub.f32 %v1137_v44, %v2355_v62  ;;  %v2361_v13 = vsub.f32 %v1138_v35, %v2355_v62  ;;  %v2364_v15 = vsub.f32 %v1139_v50, %v2355_v62  ;;  %v2368_v55 = vsub.f32 %v2213_v58, %v2355_v62 }
 0x193   :  { %v2372_v10 = vsub.f32 %v2216_v59, %v2355_v62  ;;  %v2376_v61 = vsub.f32 %v2219_v63, %v2355_v62  ;;  %v2384_v41 = vsub.f32 %v2224_v4, %v2355_v62  ;;  %v2388_v58 = vsub.f32 %v2228_v11, %v2355_v62 }
 0x194   :  { %v1435_v7 = vmul.f32 %v2368_v55, %v2368_v55  ;;  %v2394_v63 = vsub.f32 %v2233_v17, %v2355_v62  ;;  %v2400_v4 = vsub.f32 %v2236_v23, %v2355_v62  ;;  %v2406_v32 = vsub.f32 %v2240_v28, %v2355_v62 }
 0x195   :  { %v1436_v14 = vmul.f32 %v2372_v10, %v2372_v10  ;;  %v1437_v59 = vmul.f32 %v2376_v61, %v2376_v61  ;;  %v1438_v29 = vmul.f32 %v2384_v41, %v2384_v41  ;;  %v1439_v11 = vmul.f32 %v2388_v58, %v2388_v58 }
 0x196   :  { %v1440_v17 = vmul.f32 %v2394_v63, %v2394_v63  ;;  %v2412_v37 = vsub.f32 %v2244_v36, %v2355_v62  ;;  %v1441_v23 = vmul.f32 %v2400_v4, %v2400_v4  ;;  %v2418_v44 = vsub.f32 %v2249_v43, %v2355_v62 }
 0x197   :  { %v1471_v27 = vadd.f32 %v1436_v14, %v1435_v7  ;;  %v1442_v28 = vmul.f32 %v2406_v32, %v2406_v32  ;;  %v2424_v35 = vsub.f32 %v2253_v49, %v2355_v62  ;;  %v2430_v50 = vsub.f32 %v2257_v60, %v2355_v62 }
 0x198   :  { %v1443_v36 = vmul.f32 %v2412_v37, %v2412_v37  ;;  %v1444_v43 = vmul.f32 %v2418_v44, %v2418_v44  ;;  %v2436_v47 = vsub.f32 %v2261_v5, %v2355_v62  ;;  %v2442_v56 = vsub.f32 %v2265_v9, %v2355_v62 }
 0x199   :  { %v1472_v22 = vadd.f32 %v1471_v27, %v1437_v59  ;;  %v1445_v49 = vmul.f32 %v2424_v35, %v2424_v35  ;;  %v1446_v60 = vmul.f32 %v2430_v50, %v2430_v50  ;;  %v2448_v52 = vsub.f32 %v2269_v25, %v2355_v62 }
 0x19a   :  { %v1447_v5 = vmul.f32 %v2436_v47, %v2436_v47  ;;  %v2454_v3 = vsub.f32 %v2273_v39, %v2355_v62  ;;  %v1448_v9 = vmul.f32 %v2442_v56, %v2442_v56  ;;  %v2460_v14 = vsub.f32 %v2277_v46, %v2355_v62 }
 0x19b   :  { %v1473_v51 = vadd.f32 %v1472_v22, %v1438_v29  ;;  %v1449_v25 = vmul.f32 %v2448_v52, %v2448_v52  ;;  %v2466_v27 = vsub.f32 %v2280_v54, %v2355_v62  ;;  %v2472_v22 = vsub.f32 %v2284_v2, %v2355_v62 }
 0x19c   :  { %v1450_v39 = vmul.f32 %v2454_v3, %v2454_v3  ;;  %v1451_v46 = vmul.f32 %v2460_v14, %v2460_v14 }
 0x19d   :  { %v1474_v26 = vadd.f32 %v1473_v51, %v1439_v11  ;;  %v2478_v51 = vsub.f32 %v2288_v12, %v2355_v62  ;;  %v1452_v54 = vmul.f32 %v2466_v27, %v2466_v27  ;;  %v1453_v2 = vmul.f32 %v2472_v22, %v2472_v22 }
 0x19f   :  { %v1475_v42 = vadd.f32 %v1474_v26, %v1440_v17  ;;  %v2484_v26 = vsub.f32 %v2291_v16, %v2355_v62  ;;  %v1454_v12 = vmul.f32 %v2478_v51, %v2478_v51 }
 0x1a1   :  { %v1476_v34 = vadd.f32 %v1475_v42, %v1441_v23  ;;  %v2490_v42 = vsub.f32 %v2295_v24, %v2355_v62  ;;  %v1455_v16 = vmul.f32 %v2484_v26, %v2484_v26 }
 0x1a3   :  { %v1477_v45 = vadd.f32 %v1476_v34, %v1442_v28  ;;  %v2496_v34 = vsub.f32 %v2299_v19, %v2355_v62  ;;  %v1456_v24 = vmul.f32 %v2490_v42, %v2490_v42 }
 0x1a5   :  { %v1478_v38 = vadd.f32 %v1477_v45, %v1443_v36  ;;  %v2502_v45 = vsub.f32 %v2303_v40, %v2355_v62  ;;  %v1457_v19 = vmul.f32 %v2496_v34, %v2496_v34 }
 0x1a7   :  { %v1479_v53 = vadd.f32 %v1478_v38, %v1444_v43  ;;  %v2508_v38 = vsub.f32 %v2307_v48, %v2355_v62  ;;  %v1458_v40 = vmul.f32 %v2502_v45, %v2502_v45 }
 0x1a9   :  { %v1480_v0 = vadd.f32 %v1479_v53, %v1445_v49  ;;  %v2514_v53 = vsub.f32 %v2312_v57, %v2355_v62  ;;  %v1459_v48 = vmul.f32 %v2508_v38, %v2508_v38 }
 0x1ab   :  { %v1481_v1 = vadd.f32 %v1480_v0, %v1446_v60  ;;  %v2520_v0 = vsub.f32 %v2317_v31, %v2355_v62  ;;  %v1460_v57 = vmul.f32 %v2514_v53, %v2514_v53 }
 0x1ad   :  { %v1482_v7 = vadd.f32 %v1481_v1, %v1447_v5  ;;  %v2526_v1 = vsub.f32 %v2324_v20, %v2355_v62  ;;  %v1461_v31 = vmul.f32 %v2520_v0, %v2520_v0 }
 0x1af   :  { %v1483_v59 = vadd.f32 %v1482_v7, %v1448_v9  ;;  %v2532_v7 = vsub.f32 %v2329_v21, %v2355_v62  ;;  %v1394_v21 = vsub.f32 %v2344_v33, %v2355_v62  ;;  %v1470_v33 = vmul.f32 %v2364_v15, %v2364_v15 }
 0x1b1   :  { %v1484_v29 = vadd.f32 %v1483_v59, %v1449_v25  ;;  %v1392_v59 = vsub.f32 %v2334_v18, %v2355_v62 }
 0x1b3   :  { %v1485_v11 = vadd.f32 %v1484_v29, %v1450_v39  ;;  %v1462_v39 = vmul.f32 %v2526_v1, %v2526_v1  ;;  %v1393_v29 = vsub.f32 %v2339_v6, %v2355_v62  ;;  %v1468_v6 = vmul.f32 %v2358_v8, %v2358_v8 }
 0x1b5   :  { %v1486_v17 = vadd.f32 %v1485_v11, %v1451_v46  ;;  %v1463_v46 = vmul.f32 %v2532_v7, %v2532_v7  ;;  %v1465_v18 = vmul.f32 %v1393_v29, %v1393_v29 }
 0x1b7   :  { %v1487_v23 = vadd.f32 %v1486_v17, %v1452_v54  ;;  %v1464_v54 = vmul.f32 %v1392_v59, %v1392_v59 }
 0x1b9   :  { %v1488_v28 = vadd.f32 %v1487_v23, %v1453_v2  ;;  %v1395_v2 = vsub.f32 %v2348_v30, %v2355_v62 }
 0x1bb   :  { %v1489_v36 = vadd.f32 %v1488_v28, %v1454_v12  ;;  %v1466_v12 = vmul.f32 %v1394_v21, %v1394_v21 }
 0x1bd   :  { %v1490_v43 = vadd.f32 %v1489_v36, %v1455_v16  ;;  %v1467_v16 = vmul.f32 %v1395_v2, %v1395_v2 }
 0x1bf   :  { %v1491_v49 = vadd.f32 %v1490_v43, %v1456_v24  ;;  %v1469_v43 = vmul.f32 %v2361_v13, %v2361_v13 }
 0x1c1   :  { %v1492_v60 = vadd.f32 %v1491_v49, %v1457_v19 }
 0x1c3   :  { %v1493_v5 = vadd.f32 %v1492_v60, %v1458_v40 }
 0x1c5   :  { %v1494_v9 = vadd.f32 %v1493_v5, %v1459_v48 }
 0x1c7   :  { %v1495_v25 = vadd.f32 %v1494_v9, %v1460_v57 }
 0x1c9   :  { %v1496_v20 = vadd.f32 %v1495_v25, %v1461_v31 }
 0x1cb   :  { %v1497_v11 = vadd.f32 %v1496_v20, %v1462_v39 }
 0x1cd   :  { %v1498_v17 = vadd.f32 %v1497_v11, %v1463_v46 }
 0x1cf   :  { %v1499_v23 = vadd.f32 %v1498_v17, %v1464_v54 }
 0x1d1   :  { %v1500_v28 = vadd.f32 %v1499_v23, %v1465_v18 }
 0x1d3   :  { %v1501_v36 = vadd.f32 %v1500_v28, %v1466_v12 }
 0x1d5   :  { %v1502_v24 = vadd.f32 %v1501_v36, %v1467_v16 }
 0x1d7   :  { %v1503_v19 = vadd.f32 %v1502_v24, %v1468_v6 }
 0x1d9   :  { %v1504_v49 = vadd.f32 %v1503_v19, %v1469_v43 }
 0x1db   :  { %v1505_v40 = vadd.f32 %v1504_v49, %v1470_v33 }
 0x1dd   :  { %v1506_v30 = vrot.slane %v1505_v40, 4 }
 0x1df   :  { %v1507_v62 = vadd.f32 %v1506_v30, %v1505_v40 }
 0x1e1   :  { %v1508_v60 = vrot.slane %v1507_v62, 2 }
 0x1e3   :  { %v1509_v48 = vadd.f32 %v1508_v60, %v1507_v62 }
 0x1e5   :  { %v1510_v5 = vrot.slane %v1509_v48, 1 }
 0x1e7   :  { %v1511_v57 = vadd.f32 %v1510_v5, %v1509_v48 }
 0x1e9   :  { %v1512_v9 = vmul.f32 0.0034722222, %v1511_v57 }
 0x1eb   :  { %v1513_v31 = vadd.f32 1e-05, %v1512_v9 }
 0x1ed   :  { %1902 = vrsqrt.f32 %v1513_v31 }
 0x1fa   :  { %v1903_v25 = vpop.eup %1902 }
 0x1fb   :  { %v1515_v39 = vmul.f32 %v1903_v25, %v2368_v55  ;;  %v1516_v20 = vmul.f32 %v1903_v25, %v2372_v10  ;;  %v1517_v46 = vmul.f32 %v1903_v25, %v2376_v61  ;;  %v1518_v11 = vmul.f32 %v1903_v25, %v2384_v41 }
 0x1fc   :  { %v1519_v54 = vmul.f32 %v1903_v25, %v2388_v58  ;;  %v1520_v17 = vmul.f32 %v1903_v25, %v2394_v63  ;;  %v1521_v18 = vmul.f32 %v1903_v25, %v2400_v4  ;;  %v1522_v23 = vmul.f32 %v1903_v25, %v2406_v32 }
 0x1fd   :  { %v1523_v12 = vmul.f32 %v1903_v25, %v2412_v37  ;;  %v1524_v28 = vmul.f32 %v1903_v25, %v2418_v44  ;;  %v1525_v55 = vmul.f32 %v1903_v25, %v2424_v35  ;;  %v1526_v10 = vmul.f32 %v1903_v25, %v2430_v50 }
 0x1fe   :  { %v1527_v61 = vmul.f32 %v1903_v25, %v2436_v47  ;;  %v1528_v41 = vmul.f32 %v1903_v25, %v2442_v56  ;;  %v1529_v58 = vmul.f32 %v1903_v25, %v2448_v52  ;;  %v1530_v63 = vmul.f32 %v1903_v25, %v2454_v3 }
 0x1ff   :  { %v2571_v4 = vmul.f32 %v1903_v25, %v2460_v14  ;;  %v2574_v32 = vmul.f32 %v1903_v25, %v2466_v27  ;;  %v2577_v37 = vmul.f32 %v1903_v25, %v2472_v22  ;;  %v2580_v44 = vmul.f32 %v1903_v25, %v2478_v51 }
 0x200   :  { %v2583_v35 = vmul.f32 %v1903_v25, %v2484_v26  ;;  %v2586_v50 = vmul.f32 %v1903_v25, %v2490_v42  ;;  %v2589_v47 = vmul.f32 %v1903_v25, %v2496_v34  ;;  %v2592_v56 = vmul.f32 %v1903_v25, %v2502_v45 }
 0x201   :  { %v2595_v52 = vmul.f32 %v1903_v25, %v2508_v38  ;;  %v2598_v3 = vmul.f32 %v1903_v25, %v2514_v53  ;;  %v2601_v14 = vmul.f32 %v1903_v25, %v2520_v0  ;;  %v2604_v27 = vmul.f32 %v1903_v25, %v2526_v1 }
 0x202   :  { %v2607_v22 = vmul.f32 %v1903_v25, %v2532_v7  ;;  %v2609_v51 = vmul.f32 %v1903_v25, %v1392_v59  ;;  %v2611_v26 = vmul.f32 %v1903_v25, %v1393_v29  ;;  %v2613_v42 = vmul.f32 %v1903_v25, %v1394_v21 }
 0x203   :  { %v2615_v34 = vmul.f32 %v1903_v25, %v1395_v2  ;;  %v2618_v45 = vmul.f32 %v1903_v25, %v2358_v8  ;;  %v2621_v38 = vmul.f32 %v1903_v25, %v2361_v13  ;;  %v2624_v53 = vmul.f32 %v1903_v25, %v2364_v15 }
 0x204   :  { %v1551_v0 = vmax.f32 %v1515_v39, 0.0  ;;  %v1552_v1 = vmax.f32 %v1516_v20, 0.0  ;;  %v1553_v7 = vmax.f32 %v1517_v46, 0.0  ;;  %v1554_v59 = vmax.f32 %v1518_v11, 0.0 }
 0x205   :  { %v1555_v16 = vmax.f32 %v1519_v54, 0.0  ;;  %v1556_v29 = vmax.f32 %v1520_v17, 0.0  ;;  %v1557_v36 = vmax.f32 %v1521_v18, 0.0  ;;  %v1558_v21 = vmax.f32 %v1522_v23, 0.0 }
 0x206   :  { %v1559_v6 = vmax.f32 %v1523_v12, 0.0  ;;  %v1560_v2 = vmax.f32 %v1524_v28, 0.0  ;;  %v1561_v24 = vmax.f32 %v1525_v55, 0.0  ;;  %v1562_v43 = vmax.f32 %v1526_v10, 0.0  ;;  %1587 = vst [vmem:[%s2757_s3] sm:$0xff] %v1551_v0  ;;  %1588 = vst [vmem:[%s2757_s3 + $0x8] sm:$0xff] %v1552_v1 }
 0x207   :  { %1589 = vst [vmem:[%s2757_s3 + $0x10] sm:$0xff] %v1553_v7  ;;  %1590 = vst [vmem:[%s2757_s3 + $0x18] sm:$0xff] %v1554_v59  ;;  %v1563_v8 = vmax.f32 %v1527_v61, 0.0  ;;  %v1564_v13 = vmax.f32 %v1528_v41, 0.0  ;;  %v1565_v15 = vmax.f32 %v1529_v58, 0.0  ;;  %v1566_v19 = vmax.f32 %v1530_v63, 0.0 }
 0x208   :  { %1591 = vst [vmem:[%s2757_s3 + $0x20] sm:$0xff] %v1555_v16  ;;  %1592 = vst [vmem:[%s2757_s3 + $0x28] sm:$0xff] %v1556_v29  ;;  %v1567_v33 = vmax.f32 %v2571_v4, 0.0  ;;  %v1568_v49 = vmax.f32 %v2574_v32, 0.0  ;;  %v1569_v40 = vmax.f32 %v2577_v37, 0.0  ;;  %v1570_v30 = vmax.f32 %v2580_v44, 0.0 }
 0x209   :  { %1593 = vst [vmem:[%s2757_s3 + $0x30] sm:$0xff] %v1557_v36  ;;  %1594 = vst [vmem:[%s2757_s3 + $0x38] sm:$0xff] %v1558_v21  ;;  %v1571_v62 = vmax.f32 %v2583_v35, 0.0  ;;  %v1572_v60 = vmax.f32 %v2586_v50, 0.0  ;;  %v1573_v48 = vmax.f32 %v2589_v47, 0.0  ;;  %v1574_v5 = vmax.f32 %v2592_v56, 0.0 }
 0x20a   :  { %1595 = vst [vmem:[%s2757_s3 + $0x40] sm:$0xff] %v1559_v6  ;;  %1596 = vst [vmem:[%s2757_s3 + $0x48] sm:$0xff] %v1560_v2  ;;  %v1575_v57 = vmax.f32 %v2595_v52, 0.0  ;;  %v1576_v9 = vmax.f32 %v2598_v3, 0.0  ;;  %v1577_v31 = vmax.f32 %v2601_v14, 0.0  ;;  %v1578_v25 = vmax.f32 %v2604_v27, 0.0 }
 0x20b   :  { %1597 = vst [vmem:[%s2757_s3 + $0x50] sm:$0xff] %v1561_v24  ;;  %1598 = vst [vmem:[%s2757_s3 + $0x58] sm:$0xff] %v1562_v43  ;;  %v1579_v39 = vmax.f32 %v2607_v22, 0.0  ;;  %v1580_v20 = vmax.f32 %v2609_v51, 0.0  ;;  %v1581_v46 = vmax.f32 %v2611_v26, 0.0  ;;  %v1582_v11 = vmax.f32 %v2613_v42, 0.0 }
 0x20c   :  { %1599 = vst [vmem:[%s2757_s3 + $0x60] sm:$0xff] %v1563_v8  ;;  %1600 = vst [vmem:[%s2757_s3 + $0x68] sm:$0xff] %v1564_v13  ;;  %v1583_v54 = vmax.f32 %v2615_v34, 0.0  ;;  %v1584_v17 = vmax.f32 %v2618_v45, 0.0  ;;  %v1585_v18 = vmax.f32 %v2621_v38, 0.0  ;;  %v1586_v23 = vmax.f32 %v2624_v53, 0.0 }
 0x20d   :  { %1601 = vst [vmem:[%s2757_s3 + $0x70] sm:$0xff] %v1565_v15  ;;  %1602 = vst [vmem:[%s2757_s3 + $0x78] sm:$0xff] %v1566_v19 }
 0x20e   :  { %1603 = vst [vmem:[%s2757_s3 + $0x80] sm:$0xff] %v1567_v33  ;;  %1604 = vst [vmem:[%s2757_s3 + $0x88] sm:$0xff] %v1568_v49 }
 0x20f   :  { %1605 = vst [vmem:[%s2757_s3 + $0x90] sm:$0xff] %v1569_v40  ;;  %1606 = vst [vmem:[%s2757_s3 + $0x98] sm:$0xff] %v1570_v30 }
 0x210   :  { %1607 = vst [vmem:[%s2757_s3 + $0xa0] sm:$0xff] %v1571_v62  ;;  %1608 = vst [vmem:[%s2757_s3 + $0xa8] sm:$0xff] %v1572_v60 }
 0x211   :  { %1609 = vst [vmem:[%s2757_s3 + $0xb0] sm:$0xff] %v1573_v48  ;;  %1610 = vst [vmem:[%s2757_s3 + $0xb8] sm:$0xff] %v1574_v5 }
 0x212   :  { %1611 = vst [vmem:[%s2757_s3 + $0xc0] sm:$0xff] %v1575_v57  ;;  %1612 = vst [vmem:[%s2757_s3 + $0xc8] sm:$0xff] %v1576_v9 }
 0x213   :  { %1613 = vst [vmem:[%s2757_s3 + $0xd0] sm:$0xff] %v1577_v31  ;;  %1614 = vst [vmem:[%s2757_s3 + $0xd8] sm:$0xff] %v1578_v25 }
 0x214   :  { %1615 = vst [vmem:[%s2757_s3 + $0xe0] sm:$0xff] %v1579_v39  ;;  %1616 = vst [vmem:[%s2757_s3 + $0xe8] sm:$0xff] %v1580_v20 }
 0x215   :  { %1617 = vst [vmem:[%s2757_s3 + $0xf0] sm:$0xff] %v1581_v46  ;;  %1618 = vst [vmem:[%s2757_s3 + $0xf8] sm:$0xff] %v1582_v11 }
 0x216   :  { %1619 = vst [vmem:[%s2757_s3 + $0x100] sm:$0xff] %v1583_v54  ;;  %1620 = vst [vmem:[%s2757_s3 + $0x108] sm:$0xff] %v1584_v17 }
 0x217   :  { %1621 = vst [vmem:[%s2757_s3 + $0x110] sm:$0xff] %v1585_v18  ;;  %1622 = vst [vmem:[%s2757_s3 + $0x118] sm:$0xff] %v1586_v23 }

// kernel: encoder_block_forward.5
= control target key start
LH: loop header
LB: loop body
LE: loop exit
PB: predicated region body
PF: predicated region fallthrough
CT: control target
= control target key end

     0   :  { %vm80_vm0 = vcmask 261120   ;;  %s263_s0 = inlined_call_operand.vmem [shape: f32[72,32], index: 0, kind: input, shape index: {}]   ;;  %s264_s1 = inlined_call_operand.vmem [shape: f32[72,32], index: 1, kind: input, shape index: {}]   ;;  %s265_s2 = inlined_call_operand.vmem [shape: f32[72,32], index: 2, kind: input, shape index: {}]   ;;  %s266_s3 = inlined_call_operand.vmem [shape: f32[72,32], index: 3, kind: input, shape index: {}]   ;;  %s267_s4 = inlined_call_operand.vmem [shape: f32[72,32], index: 4, kind: output, shape index: {}]  }
   0x1   :  { %v17_v0 = vld [vmem:[%s263_s0] sm:$0xff]  ;;  %v18_v5 = vld [vmem:[%s263_s0 + $0x8] sm:$0xff]  ;;  %v19_v11 = vld [vmem:[%s263_s0 + $0x10] sm:$0xff] }
   0x2   :  { %v26_v1 = vld [vmem:[%s264_s1] sm:$0xff]  ;;  %v27_v6 = vld [vmem:[%s264_s1 + $0x8] sm:$0xff]  ;;  %v28_v13 = vld [vmem:[%s264_s1 + $0x10] sm:$0xff] }
   0x3   :  { %v44_v2 = vld [vmem:[%s265_s2] sm:$0xff]  ;;  %v35_v3 = vmax.f32 %v17_v0, %v26_v1  ;;  %v36_v8 = vmax.f32 %v18_v5, %v27_v6  ;;  %v45_v9 = vld [vmem:[%s265_s2 + $0x8] sm:$0xff]  ;;  %v46_v14 = vld [vmem:[%s265_s2 + $0x10] sm:$0xff]  ;;  %v37_v17 = vmax.f32 %v19_v11, %v28_v13 }
   0x4   :  { %v53_v4 = vld [vmem:[%s266_s3] sm:$0xff]  ;;  %v54_v10 = vld [vmem:[%s266_s3 + $0x8] sm:$0xff]  ;;  %v55_v15 = vld [vmem:[%s266_s3 + $0x10] sm:$0xff] }
   0x5   :  { %v62_v7 = vmax.f32 %v44_v2, %v53_v4  ;;  %v63_v12 = vmax.f32 %v45_v9, %v54_v10  ;;  %v64_v18 = vmax.f32 %v46_v14, %v55_v15  ;;  %v20_v19 = vld [vmem:[%s263_s0 + $0x18] sm:$0xff]  ;;  %v21_v25 = vld [vmem:[%s263_s0 + $0x20] sm:$0xff]  ;;  %v22_v32 = vld [vmem:[%s263_s0 + $0x28] sm:$0xff] }
   0x6   :  { %v29_v20 = vld [vmem:[%s264_s1 + $0x18] sm:$0xff]  ;;  %v30_v26 = vld [vmem:[%s264_s1 + $0x20] sm:$0xff]  ;;  %v31_v34 = vld [vmem:[%s264_s1 + $0x28] sm:$0xff] }
   0x7   :  { %v71_v16 = vmax.f32 %v35_v3, %v62_v7  ;;  %v47_v21 = vld [vmem:[%s265_s2 + $0x18] sm:$0xff]  ;;  %v72_v22 = vmax.f32 %v36_v8, %v63_v12  ;;  %v38_v23 = vmax.f32 %v20_v19, %v29_v20  ;;  %v73_v27 = vmax.f32 %v37_v17, %v64_v18  ;;  %v48_v30 = vld [vmem:[%s265_s2 + $0x20] sm:$0xff]  ;;  %v49_v35 = vld [vmem:[%s265_s2 + $0x28] sm:$0xff] }
   0x8   :  { %v56_v24 = vld [vmem:[%s266_s3 + $0x18] sm:$0xff]  ;;  %v39_v29 = vmax.f32 %v21_v25, %v30_v26  ;;  %v57_v31 = vld [vmem:[%s266_s3 + $0x20] sm:$0xff]  ;;  %v58_v36 = vld [vmem:[%s266_s3 + $0x28] sm:$0xff]  ;;  %v40_v38 = vmax.f32 %v22_v32, %v31_v34 }
   0x9   :  { %81 = vst.msk [vmem:[%s267_s4] sm:$0xff] %vm80_vm0, %v71_v16  ;;  %v65_v28 = vmax.f32 %v47_v21, %v56_v24  ;;  %82 = vst.msk [vmem:[%s267_s4 + $0x8] sm:$0xff] %vm80_vm0, %v72_v22  ;;  %v66_v33 = vmax.f32 %v48_v30, %v57_v31  ;;  %v67_v39 = vmax.f32 %v49_v35, %v58_v36  ;;  %v23_v40 = vld [vmem:[%s263_s0 + $0x30] sm:$0xff]  ;;  %v24_v46 = vld [vmem:[%s263_s0 + $0x38] sm:$0xff] }
   0xa   :  { %83 = vst.msk [vmem:[%s267_s4 + $0x10] sm:$0xff] %vm80_vm0, %v73_v27  ;;  %v32_v41 = vld [vmem:[%s264_s1 + $0x30] sm:$0xff]  ;;  %v33_v47 = vld [vmem:[%s264_s1 + $0x38] sm:$0xff]  ;;  %v25_v53 = vld [vmem:[%s263_s0 + $0x40] sm:$0xff] }
   0xb   :  { %v74_v37 = vmax.f32 %v38_v23, %v65_v28  ;;  %v50_v42 = vld [vmem:[%s265_s2 + $0x30] sm:$0xff]  ;;  %v75_v43 = vmax.f32 %v39_v29, %v66_v33  ;;  %v41_v44 = vmax.f32 %v23_v40, %v32_v41  ;;  %v76_v48 = vmax.f32 %v40_v38, %v67_v39  ;;  %v51_v51 = vld [vmem:[%s265_s2 + $0x38] sm:$0xff]  ;;  %v34_v55 = vld [vmem:[%s264_s1 + $0x40] sm:$0xff] }
   0xc   :  { %v59_v45 = vld [vmem:[%s266_s3 + $0x30] sm:$0xff]  ;;  %v42_v50 = vmax.f32 %v24_v46, %v33_v47  ;;  %v60_v52 = vld [vmem:[%s266_s3 + $0x38] sm:$0xff]  ;;  %v52_v56 = vld [vmem:[%s265_s2 + $0x40] sm:$0xff]  ;;  %v43_v59 = vmax.f32 %v25_v53, %v34_v55 }
   0xd   :  { %84 = vst.msk [vmem:[%s267_s4 + $0x18] sm:$0xff] %vm80_vm0, %v74_v37  ;;  %v68_v49 = vmax.f32 %v50_v42, %v59_v45  ;;  %85 = vst.msk [vmem:[%s267_s4 + $0x20] sm:$0xff] %vm80_vm0, %v75_v43  ;;  %v69_v54 = vmax.f32 %v51_v51, %v60_v52  ;;  %v61_v57 = vld [vmem:[%s266_s3 + $0x40] sm:$0xff] }
   0xe   :  { %86 = vst.msk [vmem:[%s267_s4 + $0x28] sm:$0xff] %vm80_vm0, %v76_v48  ;;  %v70_v60 = vmax.f32 %v52_v56, %v61_v57 }
   0xf   :  { %v77_v58 = vmax.f32 %v41_v44, %v68_v49  ;;  %v78_v61 = vmax.f32 %v42_v50, %v69_v54 }
  0x10   :  { %v79_v62 = vmax.f32 %v43_v59, %v70_v60 }
  0x11   :  { %87 = vst.msk [vmem:[%s267_s4 + $0x30] sm:$0xff] %vm80_vm0, %v77_v58  ;;  %88 = vst.msk [vmem:[%s267_s4 + $0x38] sm:$0xff] %vm80_vm0, %v78_v61 }
  0x12   :  { %89 = vst.msk [vmem:[%s267_s4 + $0x40] sm:$0xff] %vm80_vm0, %v79_v62 }

</bundles_post_ra>
